<compile_context>
chip_gen: v6e
topology: v6e:2x2x1
jax: 0.10.0
libtpu: 0.0.40
codegen_flags: <defaults>
</compile_context>

<pallas_src>
import functools

import jax
import jax.numpy as jnp
import numpy as np
from jax.experimental import pallas as pl
from jax.experimental.pallas import tpu as pltpu

EPS = 1e-5


def _round_up(x, m):
    return ((x + m - 1) // m) * m


def conv_batch_relu(x_nchw, weight_oihw, bias, gamma, beta,
                    *, tile_m=512, row_chunk=128, matmul_dtype=jnp.bfloat16):
    """Forward pass of ConvBatchReLU. Input/output are NCHW (PyTorch convention)."""
    del bias  # conv bias cancels exactly under training-mode BN mean subtraction

    N, Cin, H, W = x_nchw.shape
    Cout = weight_oihw.shape[0]
    K = 9 * Cin                      # unpadded im2col depth (full-array-dim block)
    C_pad = _round_up(Cout, 128)     # lane-dense matmul width (VMEM / MXU only)
    M = N * H * W
    assert row_chunk % 8 == 0 and tile_m % row_chunk == 0
    M_pad = _round_up(M, tile_m)
    num_tiles = M_pad // tile_m
    n_chunks = tile_m // row_chunk

    # ---- glue (plain JAX, fused by XLA): NCHW->NHWC, 'same' pad, im2col, weight pack --
    x = jnp.transpose(x_nchw, (0, 2, 3, 1)).astype(jnp.float32)            # NHWC
    x_sp = jnp.pad(x, ((0, 0), (1, 1), (1, 1), (0, 0)))
    patches = [x_sp[:, kh:kh + H, kw:kw + W, :]
               for kh in range(3) for kw in range(3)]
    p = jnp.concatenate(patches, axis=-1).reshape(M, K)
    p = jnp.pad(p, ((0, M_pad - M), (0, 0))).astype(matmul_dtype)          # (M_pad, K)

    w = jnp.transpose(weight_oihw, (2, 3, 1, 0)).reshape(K, Cout).astype(jnp.float32)
    w = jnp.pad(w, ((0, 0), (0, C_pad - Cout))).astype(matmul_dtype)       # (K, C_pad)

    cparams = pltpu.CompilerParams(dimension_semantics=("parallel",),
                                   vmem_limit_bytes=48 * 1024 * 1024)

    # ---------------- pass 1: conv GEMM + partial BN statistics (stats only to HBM) ---
    def conv_stats_kernel(p_ref, w_ref, sum_ref, sq_ref):
        w_v = w_ref[...]

        def body(c, carry):
            s, q = carry
            r = pl.multiple_of(c * row_chunk, row_chunk)
            acc = jnp.dot(p_ref[pl.ds(r, row_chunk), :], w_v,
                          preferred_element_type=jnp.float32)
            # Fold row_chunk rows into 8 sublane partials: tile-aligned (8, C_pad)
            # slices -> pure VPU adds (no cross-lane XLU reduction), tiny live set.
            for rr in range(0, row_chunk, 8):
                blk = acc[rr:rr + 8, :]
                s = s + blk
                q = q + blk * blk
            return s, q

        zero = jnp.zeros((8, C_pad), jnp.float32)
        s, q = jax.lax.fori_loop(0, n_chunks, body, (zero, zero), unroll=True)
        sum_ref[...] = s
        sq_ref[...] = q

    psum, psq = pl.pallas_call(
        conv_stats_kernel,
        out_shape=(jax.ShapeDtypeStruct((num_tiles * 8, C_pad), jnp.float32),
                   jax.ShapeDtypeStruct((num_tiles * 8, C_pad), jnp.float32)),
        grid_spec=pltpu.PrefetchScalarGridSpec(
            num_scalar_prefetch=0,
            grid=(num_tiles,),
            in_specs=[pl.BlockSpec((tile_m, K), lambda i: (i, 0)),
                      pl.BlockSpec((K, C_pad), lambda i: (0, 0))],
            out_specs=(pl.BlockSpec((8, C_pad), lambda i: (i, 0)),
                       pl.BlockSpec((8, C_pad), lambda i: (i, 0)))),
        compiler_params=cparams,
    )(p, w)

    # ---- tiny O(C) stats finalize in plain JAX ----
    # Padded rows/channels contribute exact zeros (zero weights, no bias), so dividing
    # by the true element count M keeps the statistics exact.
    # NOTE: E[x^2]-E[x]^2 in f32 can cancel for very large M / large activations;
    # switch to a per-tile-offset or two-pass variance if strict parity at scale is
    # required.
    m = jnp.float32(M)
    mean = jnp.sum(psum, axis=0) / m
    var = jnp.maximum(jnp.sum(psq, axis=0) / m - mean * mean, 0.0)
    inv = jax.lax.rsqrt(var + EPS)
    gamma_p = jnp.pad(gamma.astype(jnp.float32), (0, C_pad - Cout))
    beta_p = jnp.pad(beta.astype(jnp.float32), (0, C_pad - Cout))
    scale = (gamma_p * inv).reshape(1, C_pad)
    shift = (beta_p - mean * gamma_p * inv).reshape(1, C_pad)

    # ---- pass 2: recompute GEMM, normalize (one FMA/elt) + ReLU, store true Cout -----
    def conv_bn_relu_kernel(p_ref, w_ref, scale_ref, shift_ref, o_ref):
        w_v = w_ref[...]
        sc = scale_ref[...]          # (1, C_pad), sublane-broadcast by the VPU
        sh = shift_ref[...]

        def body(c, carry):
            r = pl.multiple_of(c * row_chunk, row_chunk)
            acc = jnp.dot(p_ref[pl.ds(r, row_chunk), :], w_v,
                          preferred_element_type=jnp.float32)
            y = jnp.maximum(acc * sc + sh, 0.0)
            o_ref[pl.ds(r, row_chunk), :] = y[:, :Cout]   # only real channels hit HBM
            return carry

        jax.lax.fori_loop(0, n_chunks, body, 0, unroll=True)

    out = pl.pallas_call(
        conv_bn_relu_kernel,
        out_shape=jax.ShapeDtypeStruct((M_pad, Cout), jnp.float32),
        grid_spec=pltpu.PrefetchScalarGridSpec(
            num_scalar_prefetch=0,
            grid=(num_tiles,),
            in_specs=[pl.BlockSpec((tile_m, K), lambda i: (i, 0)),
                      pl.BlockSpec((K, C_pad), lambda i: (0, 0)),
                      pl.BlockSpec((1, C_pad), lambda i: (0, 0)),
                      pl.BlockSpec((1, C_pad), lambda i: (0, 0))],
            out_specs=pl.BlockSpec((tile_m, Cout), lambda i: (i, 0))),
        compiler_params=cparams,
    )(p, w, scale, shift)

    # NOTE: if the consumer accepts NHWC, return out[:M].reshape(N, H, W, Cout) directly
    # and skip this transpose (saves an extra output-sized HBM round-trip in XLA).
    out = out[:M].reshape(N, H, W, Cout)
    return jnp.transpose(out, (0, 3, 1, 2))                                # NHWC -> NCHW


def reference(x_nchw, weight_oihw, bias, gamma, beta):
    """Pure-JAX reference matching PyTorch ConvBatchReLU.forward (training-mode BN)."""
    conv = jax.lax.conv_general_dilated(
        x_nchw, weight_oihw, window_strides=(1, 1), padding="SAME",
        dimension_numbers=("NCHW", "OIHW", "NCHW"))
    conv = conv + bias.reshape(1, -1, 1, 1)
    mean = jnp.mean(conv, axis=(0, 2, 3), keepdims=True)
    var = jnp.mean((conv - mean) ** 2, axis=(0, 2, 3), keepdims=True)
    y = (conv - mean) * jax.lax.rsqrt(var + EPS)
    y = y * gamma.reshape(1, -1, 1, 1) + beta.reshape(1, -1, 1, 1)
    return jnp.maximum(y, 0.0)


if __name__ == "__main__":
    # Small shapes consistent with the module: N=2, Cin=4, H=W=16, Cout=8
    N, Cin, H, W, Cout = 2, 4, 16, 16, 8

    key = jax.random.PRNGKey(0)
    kx, kw, kb, kg, kbt = jax.random.split(key, 5)

    x = jax.random.normal(kx, (N, Cin, H, W), dtype=jnp.float32)

    fan_in = Cin * 3 * 3
    bound = 1.0 / np.sqrt(fan_in)
    weight = jax.random.uniform(kw, (Cout, Cin, 3, 3), jnp.float32, -bound, bound)
    bias = jax.random.uniform(kb, (Cout,), jnp.float32, -bound, bound)
    gamma = 1.0 + 0.1 * jax.random.normal(kg, (Cout,), jnp.float32)
    beta = 0.1 * jax.random.normal(kbt, (Cout,), jnp.float32)

    ref = jax.block_until_ready(reference(x, weight, bias, gamma, beta))

    # Production path: bf16 MXU operands / DMA, f32 accumulation + BN epilogue.
    fwd_bf16 = jax.jit(conv_batch_relu)
    out_bf16 = jax.block_until_ready(fwd_bf16(x, weight, bias, gamma, beta))
    np.testing.assert_allclose(np.asarray(out_bf16), np.asarray(ref),
                               rtol=5e-2, atol=5e-2)

    # Exactness path: f32 MXU operands (tight tolerance vs. the pure-JAX reference).
    fwd_f32 = jax.jit(functools.partial(conv_batch_relu, matmul_dtype=jnp.float32))
    out_f32 = jax.block_until_ready(fwd_f32(x, weight, bias, gamma, beta))
    np.testing.assert_allclose(np.asarray(out_f32), np.asarray(ref),
                               rtol=1e-4, atol=1e-4)

    print("KERNEL_OK")
</pallas_src>

<mosaic_0001>
module attributes {stable_mosaic.version = 11 : i64} {
  func.func @conv_stats_kernel(%arg0: i32, %arg1: memref<512x36xbf16, #tpu.memory_space<vmem>>, %arg2: memref<36x128xbf16, #tpu.memory_space<vmem>>, %arg3: memref<8x128xf32, #tpu.memory_space<vmem>>, %arg4: memref<8x128xf32, #tpu.memory_space<vmem>>) attributes {dimension_semantics = [#tpu.dimension_semantics<parallel>], iteration_bounds = array<i64: 1>, scalar_prefetch = 0 : i64, scratch_operands = 0 : i64, tpu.core_type = #tpu.core_type<tc>, window_params = [{transform_indices = @transform_0, window_bounds = array<i64: 512, 36>}, {pipeline_mode = #tpu.pipeline_mode<synchronous>, transform_indices = @transform_1, window_bounds = array<i64: 36, 128>}, {transform_indices = @transform_2, window_bounds = array<i64: 8, 128>}, {transform_indices = @transform_3, window_bounds = array<i64: 8, 128>}]} {
    %c0 = arith.constant 0 : index
    %c0_0 = arith.constant 0 : index
    %0 = vector.load %arg2[%c0, %c0_0] : memref<36x128xbf16, #tpu.memory_space<vmem>>, vector<36x128xbf16>
    %cst = arith.constant 0.000000e+00 : f32
    %1 = vector.broadcast %cst : f32 to vector<8x128xf32>
    %c0_i32 = arith.constant 0 : i32
    %c128_i32 = arith.constant 128 : i32
    %2 = arith.muli %c0_i32, %c128_i32 : i32
    %3 = tpu.assume_multiple %2, 128 : i32
    %4 = arith.index_cast %3 : i32 to index
    %c0_1 = arith.constant 0 : index
    %5 = vector.load %arg1[%4, %c0_1] : memref<512x36xbf16, #tpu.memory_space<vmem>>, vector<128x36xbf16>
    %cst_2 = arith.constant dense<0.000000e+00> : vector<128x128xf32>
    %6 = tpu.matmul %5, %0, %cst_2 {dimension_numbers = #tpu.dot_dimension_numbers<[1], [0], [0], [1], [0, 0, 1, 1], [], []>} : vector<128x36xbf16>, vector<36x128xbf16>, vector<128x128xf32> -> vector<128x128xf32>
    %7 = vector.extract_strided_slice %6 {offsets = [0, 0], sizes = [8, 128], strides = [1, 1]} : vector<128x128xf32> to vector<8x128xf32>
    %8 = arith.addf %1, %7 : vector<8x128xf32>
    %9 = arith.mulf %7, %7 : vector<8x128xf32>
    %10 = arith.addf %1, %9 : vector<8x128xf32>
    %11 = vector.extract_strided_slice %6 {offsets = [8, 0], sizes = [8, 128], strides = [1, 1]} : vector<128x128xf32> to vector<8x128xf32>
    %12 = arith.addf %8, %11 : vector<8x128xf32>
    %13 = arith.mulf %11, %11 : vector<8x128xf32>
    %14 = arith.addf %10, %13 : vector<8x128xf32>
    %15 = vector.extract_strided_slice %6 {offsets = [16, 0], sizes = [8, 128], strides = [1, 1]} : vector<128x128xf32> to vector<8x128xf32>
    %16 = arith.addf %12, %15 : vector<8x128xf32>
    %17 = arith.mulf %15, %15 : vector<8x128xf32>
    %18 = arith.addf %14, %17 : vector<8x128xf32>
    %19 = vector.extract_strided_slice %6 {offsets = [24, 0], sizes = [8, 128], strides = [1, 1]} : vector<128x128xf32> to vector<8x128xf32>
    %20 = arith.addf %16, %19 : vector<8x128xf32>
    %21 = arith.mulf %19, %19 : vector<8x128xf32>
    %22 = arith.addf %18, %21 : vector<8x128xf32>
    %23 = vector.extract_strided_slice %6 {offsets = [32, 0], sizes = [8, 128], strides = [1, 1]} : vector<128x128xf32> to vector<8x128xf32>
    %24 = arith.addf %20, %23 : vector<8x128xf32>
    %25 = arith.mulf %23, %23 : vector<8x128xf32>
    %26 = arith.addf %22, %25 : vector<8x128xf32>
    %27 = vector.extract_strided_slice %6 {offsets = [40, 0], sizes = [8, 128], strides = [1, 1]} : vector<128x128xf32> to vector<8x128xf32>
    %28 = arith.addf %24, %27 : vector<8x128xf32>
    %29 = arith.mulf %27, %27 : vector<8x128xf32>
    %30 = arith.addf %26, %29 : vector<8x128xf32>
    %31 = vector.extract_strided_slice %6 {offsets = [48, 0], sizes = [8, 128], strides = [1, 1]} : vector<128x128xf32> to vector<8x128xf32>
    %32 = arith.addf %28, %31 : vector<8x128xf32>
    %33 = arith.mulf %31, %31 : vector<8x128xf32>
    %34 = arith.addf %30, %33 : vector<8x128xf32>
    %35 = vector.extract_strided_slice %6 {offsets = [56, 0], sizes = [8, 128], strides = [1, 1]} : vector<128x128xf32> to vector<8x128xf32>
    %36 = arith.addf %32, %35 : vector<8x128xf32>
    %37 = arith.mulf %35, %35 : vector<8x128xf32>
    %38 = arith.addf %34, %37 : vector<8x128xf32>
    %39 = vector.extract_strided_slice %6 {offsets = [64, 0], sizes = [8, 128], strides = [1, 1]} : vector<128x128xf32> to vector<8x128xf32>
    %40 = arith.addf %36, %39 : vector<8x128xf32>
    %41 = arith.mulf %39, %39 : vector<8x128xf32>
    %42 = arith.addf %38, %41 : vector<8x128xf32>
    %43 = vector.extract_strided_slice %6 {offsets = [72, 0], sizes = [8, 128], strides = [1, 1]} : vector<128x128xf32> to vector<8x128xf32>
    %44 = arith.addf %40, %43 : vector<8x128xf32>
    %45 = arith.mulf %43, %43 : vector<8x128xf32>
    %46 = arith.addf %42, %45 : vector<8x128xf32>
    %47 = vector.extract_strided_slice %6 {offsets = [80, 0], sizes = [8, 128], strides = [1, 1]} : vector<128x128xf32> to vector<8x128xf32>
    %48 = arith.addf %44, %47 : vector<8x128xf32>
    %49 = arith.mulf %47, %47 : vector<8x128xf32>
    %50 = arith.addf %46, %49 : vector<8x128xf32>
    %51 = vector.extract_strided_slice %6 {offsets = [88, 0], sizes = [8, 128], strides = [1, 1]} : vector<128x128xf32> to vector<8x128xf32>
    %52 = arith.addf %48, %51 : vector<8x128xf32>
    %53 = arith.mulf %51, %51 : vector<8x128xf32>
    %54 = arith.addf %50, %53 : vector<8x128xf32>
    %55 = vector.extract_strided_slice %6 {offsets = [96, 0], sizes = [8, 128], strides = [1, 1]} : vector<128x128xf32> to vector<8x128xf32>
    %56 = arith.addf %52, %55 : vector<8x128xf32>
    %57 = arith.mulf %55, %55 : vector<8x128xf32>
    %58 = arith.addf %54, %57 : vector<8x128xf32>
    %59 = vector.extract_strided_slice %6 {offsets = [104, 0], sizes = [8, 128], strides = [1, 1]} : vector<128x128xf32> to vector<8x128xf32>
    %60 = arith.addf %56, %59 : vector<8x128xf32>
    %61 = arith.mulf %59, %59 : vector<8x128xf32>
    %62 = arith.addf %58, %61 : vector<8x128xf32>
    %63 = vector.extract_strided_slice %6 {offsets = [112, 0], sizes = [8, 128], strides = [1, 1]} : vector<128x128xf32> to vector<8x128xf32>
    %64 = arith.addf %60, %63 : vector<8x128xf32>
    %65 = arith.mulf %63, %63 : vector<8x128xf32>
    %66 = arith.addf %62, %65 : vector<8x128xf32>
    %67 = vector.extract_strided_slice %6 {offsets = [120, 0], sizes = [8, 128], strides = [1, 1]} : vector<128x128xf32> to vector<8x128xf32>
    %68 = arith.addf %64, %67 : vector<8x128xf32>
    %69 = arith.mulf %67, %67 : vector<8x128xf32>
    %70 = arith.addf %66, %69 : vector<8x128xf32>
    %c1_i32 = arith.constant 1 : i32
    %c128_i32_3 = arith.constant 128 : i32
    %71 = arith.muli %c1_i32, %c128_i32_3 : i32
    %72 = tpu.assume_multiple %71, 128 : i32
    %73 = arith.index_cast %72 : i32 to index
    %c0_4 = arith.constant 0 : index
    %74 = vector.load %arg1[%73, %c0_4] : memref<512x36xbf16, #tpu.memory_space<vmem>>, vector<128x36xbf16>
    %cst_5 = arith.constant dense<0.000000e+00> : vector<128x128xf32>
    %75 = tpu.matmul %74, %0, %cst_5 {dimension_numbers = #tpu.dot_dimension_numbers<[1], [0], [0], [1], [0, 0, 1, 1], [], []>} : vector<128x36xbf16>, vector<36x128xbf16>, vector<128x128xf32> -> vector<128x128xf32>
    %76 = vector.extract_strided_slice %75 {offsets = [0, 0], sizes = [8, 128], strides = [1, 1]} : vector<128x128xf32> to vector<8x128xf32>
    %77 = arith.addf %68, %76 : vector<8x128xf32>
    %78 = arith.mulf %76, %76 : vector<8x128xf32>
    %79 = arith.addf %70, %78 : vector<8x128xf32>
    %80 = vector.extract_strided_slice %75 {offsets = [8, 0], sizes = [8, 128], strides = [1, 1]} : vector<128x128xf32> to vector<8x128xf32>
    %81 = arith.addf %77, %80 : vector<8x128xf32>
    %82 = arith.mulf %80, %80 : vector<8x128xf32>
    %83 = arith.addf %79, %82 : vector<8x128xf32>
    %84 = vector.extract_strided_slice %75 {offsets = [16, 0], sizes = [8, 128], strides = [1, 1]} : vector<128x128xf32> to vector<8x128xf32>
    %85 = arith.addf %81, %84 : vector<8x128xf32>
    %86 = arith.mulf %84, %84 : vector<8x128xf32>
    %87 = arith.addf %83, %86 : vector<8x128xf32>
    %88 = vector.extract_strided_slice %75 {offsets = [24, 0], sizes = [8, 128], strides = [1, 1]} : vector<128x128xf32> to vector<8x128xf32>
    %89 = arith.addf %85, %88 : vector<8x128xf32>
    %90 = arith.mulf %88, %88 : vector<8x128xf32>
    %91 = arith.addf %87, %90 : vector<8x128xf32>
    %92 = vector.extract_strided_slice %75 {offsets = [32, 0], sizes = [8, 128], strides = [1, 1]} : vector<128x128xf32> to vector<8x128xf32>
    %93 = arith.addf %89, %92 : vector<8x128xf32>
    %94 = arith.mulf %92, %92 : vector<8x128xf32>
    %95 = arith.addf %91, %94 : vector<8x128xf32>
    %96 = vector.extract_strided_slice %75 {offsets = [40, 0], sizes = [8, 128], strides = [1, 1]} : vector<128x128xf32> to vector<8x128xf32>
    %97 = arith.addf %93, %96 : vector<8x128xf32>
    %98 = arith.mulf %96, %96 : vector<8x128xf32>
    %99 = arith.addf %95, %98 : vector<8x128xf32>
    %100 = vector.extract_strided_slice %75 {offsets = [48, 0], sizes = [8, 128], strides = [1, 1]} : vector<128x128xf32> to vector<8x128xf32>
    %101 = arith.addf %97, %100 : vector<8x128xf32>
    %102 = arith.mulf %100, %100 : vector<8x128xf32>
    %103 = arith.addf %99, %102 : vector<8x128xf32>
    %104 = vector.extract_strided_slice %75 {offsets = [56, 0], sizes = [8, 128], strides = [1, 1]} : vector<128x128xf32> to vector<8x128xf32>
    %105 = arith.addf %101, %104 : vector<8x128xf32>
    %106 = arith.mulf %104, %104 : vector<8x128xf32>
    %107 = arith.addf %103, %106 : vector<8x128xf32>
    %108 = vector.extract_strided_slice %75 {offsets = [64, 0], sizes = [8, 128], strides = [1, 1]} : vector<128x128xf32> to vector<8x128xf32>
    %109 = arith.addf %105, %108 : vector<8x128xf32>
    %110 = arith.mulf %108, %108 : vector<8x128xf32>
    %111 = arith.addf %107, %110 : vector<8x128xf32>
    %112 = vector.extract_strided_slice %75 {offsets = [72, 0], sizes = [8, 128], strides = [1, 1]} : vector<128x128xf32> to vector<8x128xf32>
    %113 = arith.addf %109, %112 : vector<8x128xf32>
    %114 = arith.mulf %112, %112 : vector<8x128xf32>
    %115 = arith.addf %111, %114 : vector<8x128xf32>
    %116 = vector.extract_strided_slice %75 {offsets = [80, 0], sizes = [8, 128], strides = [1, 1]} : vector<128x128xf32> to vector<8x128xf32>
    %117 = arith.addf %113, %116 : vector<8x128xf32>
    %118 = arith.mulf %116, %116 : vector<8x128xf32>
    %119 = arith.addf %115, %118 : vector<8x128xf32>
    %120 = vector.extract_strided_slice %75 {offsets = [88, 0], sizes = [8, 128], strides = [1, 1]} : vector<128x128xf32> to vector<8x128xf32>
    %121 = arith.addf %117, %120 : vector<8x128xf32>
    %122 = arith.mulf %120, %120 : vector<8x128xf32>
    %123 = arith.addf %119, %122 : vector<8x128xf32>
    %124 = vector.extract_strided_slice %75 {offsets = [96, 0], sizes = [8, 128], strides = [1, 1]} : vector<128x128xf32> to vector<8x128xf32>
    %125 = arith.addf %121, %124 : vector<8x128xf32>
    %126 = arith.mulf %124, %124 : vector<8x128xf32>
    %127 = arith.addf %123, %126 : vector<8x128xf32>
    %128 = vector.extract_strided_slice %75 {offsets = [104, 0], sizes = [8, 128], strides = [1, 1]} : vector<128x128xf32> to vector<8x128xf32>
    %129 = arith.addf %125, %128 : vector<8x128xf32>
    %130 = arith.mulf %128, %128 : vector<8x128xf32>
    %131 = arith.addf %127, %130 : vector<8x128xf32>
    %132 = vector.extract_strided_slice %75 {offsets = [112, 0], sizes = [8, 128], strides = [1, 1]} : vector<128x128xf32> to vector<8x128xf32>
    %133 = arith.addf %129, %132 : vector<8x128xf32>
    %134 = arith.mulf %132, %132 : vector<8x128xf32>
    %135 = arith.addf %131, %134 : vector<8x128xf32>
    %136 = vector.extract_strided_slice %75 {offsets = [120, 0], sizes = [8, 128], strides = [1, 1]} : vector<128x128xf32> to vector<8x128xf32>
    %137 = arith.addf %133, %136 : vector<8x128xf32>
    %138 = arith.mulf %136, %136 : vector<8x128xf32>
    %139 = arith.addf %135, %138 : vector<8x128xf32>
    %c2_i32 = arith.constant 2 : i32
    %c128_i32_6 = arith.constant 128 : i32
    %140 = arith.muli %c2_i32, %c128_i32_6 : i32
    %141 = tpu.assume_multiple %140, 128 : i32
    %142 = arith.index_cast %141 : i32 to index
    %c0_7 = arith.constant 0 : index
    %143 = vector.load %arg1[%142, %c0_7] : memref<512x36xbf16, #tpu.memory_space<vmem>>, vector<128x36xbf16>
    %cst_8 = arith.constant dense<0.000000e+00> : vector<128x128xf32>
    %144 = tpu.matmul %143, %0, %cst_8 {dimension_numbers = #tpu.dot_dimension_numbers<[1], [0], [0], [1], [0, 0, 1, 1], [], []>} : vector<128x36xbf16>, vector<36x128xbf16>, vector<128x128xf32> -> vector<128x128xf32>
    %145 = vector.extract_strided_slice %144 {offsets = [0, 0], sizes = [8, 128], strides = [1, 1]} : vector<128x128xf32> to vector<8x128xf32>
    %146 = arith.addf %137, %145 : vector<8x128xf32>
    %147 = arith.mulf %145, %145 : vector<8x128xf32>
    %148 = arith.addf %139, %147 : vector<8x128xf32>
    %149 = vector.extract_strided_slice %144 {offsets = [8, 0], sizes = [8, 128], strides = [1, 1]} : vector<128x128xf32> to vector<8x128xf32>
    %150 = arith.addf %146, %149 : vector<8x128xf32>
    %151 = arith.mulf %149, %149 : vector<8x128xf32>
    %152 = arith.addf %148, %151 : vector<8x128xf32>
    %153 = vector.extract_strided_slice %144 {offsets = [16, 0], sizes = [8, 128], strides = [1, 1]} : vector<128x128xf32> to vector<8x128xf32>
    %154 = arith.addf %150, %153 : vector<8x128xf32>
    %155 = arith.mulf %153, %153 : vector<8x128xf32>
    %156 = arith.addf %152, %155 : vector<8x128xf32>
    %157 = vector.extract_strided_slice %144 {offsets = [24, 0], sizes = [8, 128], strides = [1, 1]} : vector<128x128xf32> to vector<8x128xf32>
    %158 = arith.addf %154, %157 : vector<8x128xf32>
    %159 = arith.mulf %157, %157 : vector<8x128xf32>
    %160 = arith.addf %156, %159 : vector<8x128xf32>
    %161 = vector.extract_strided_slice %144 {offsets = [32, 0], sizes = [8, 128], strides = [1, 1]} : vector<128x128xf32> to vector<8x128xf32>
    %162 = arith.addf %158, %161 : vector<8x128xf32>
    %163 = arith.mulf %161, %161 : vector<8x128xf32>
    %164 = arith.addf %160, %163 : vector<8x128xf32>
    %165 = vector.extract_strided_slice %144 {offsets = [40, 0], sizes = [8, 128], strides = [1, 1]} : vector<128x128xf32> to vector<8x128xf32>
    %166 = arith.addf %162, %165 : vector<8x128xf32>
    %167 = arith.mulf %165, %165 : vector<8x128xf32>
    %168 = arith.addf %164, %167 : vector<8x128xf32>
    %169 = vector.extract_strided_slice %144 {offsets = [48, 0], sizes = [8, 128], strides = [1, 1]} : vector<128x128xf32> to vector<8x128xf32>
    %170 = arith.addf %166, %169 : vector<8x128xf32>
    %171 = arith.mulf %169, %169 : vector<8x128xf32>
    %172 = arith.addf %168, %171 : vector<8x128xf32>
    %173 = vector.extract_strided_slice %144 {offsets = [56, 0], sizes = [8, 128], strides = [1, 1]} : vector<128x128xf32> to vector<8x128xf32>
    %174 = arith.addf %170, %173 : vector<8x128xf32>
    %175 = arith.mulf %173, %173 : vector<8x128xf32>
    %176 = arith.addf %172, %175 : vector<8x128xf32>
    %177 = vector.extract_strided_slice %144 {offsets = [64, 0], sizes = [8, 128], strides = [1, 1]} : vector<128x128xf32> to vector<8x128xf32>
    %178 = arith.addf %174, %177 : vector<8x128xf32>
    %179 = arith.mulf %177, %177 : vector<8x128xf32>
    %180 = arith.addf %176, %179 : vector<8x128xf32>
    %181 = vector.extract_strided_slice %144 {offsets = [72, 0], sizes = [8, 128], strides = [1, 1]} : vector<128x128xf32> to vector<8x128xf32>
    %182 = arith.addf %178, %181 : vector<8x128xf32>
    %183 = arith.mulf %181, %181 : vector<8x128xf32>
    %184 = arith.addf %180, %183 : vector<8x128xf32>
    %185 = vector.extract_strided_slice %144 {offsets = [80, 0], sizes = [8, 128], strides = [1, 1]} : vector<128x128xf32> to vector<8x128xf32>
    %186 = arith.addf %182, %185 : vector<8x128xf32>
    %187 = arith.mulf %185, %185 : vector<8x128xf32>
    %188 = arith.addf %184, %187 : vector<8x128xf32>
    %189 = vector.extract_strided_slice %144 {offsets = [88, 0], sizes = [8, 128], strides = [1, 1]} : vector<128x128xf32> to vector<8x128xf32>
    %190 = arith.addf %186, %189 : vector<8x128xf32>
    %191 = arith.mulf %189, %189 : vector<8x128xf32>
    %192 = arith.addf %188, %191 : vector<8x128xf32>
    %193 = vector.extract_strided_slice %144 {offsets = [96, 0], sizes = [8, 128], strides = [1, 1]} : vector<128x128xf32> to vector<8x128xf32>
    %194 = arith.addf %190, %193 : vector<8x128xf32>
    %195 = arith.mulf %193, %193 : vector<8x128xf32>
    %196 = arith.addf %192, %195 : vector<8x128xf32>
    %197 = vector.extract_strided_slice %144 {offsets = [104, 0], sizes = [8, 128], strides = [1, 1]} : vector<128x128xf32> to vector<8x128xf32>
    %198 = arith.addf %194, %197 : vector<8x128xf32>
    %199 = arith.mulf %197, %197 : vector<8x128xf32>
    %200 = arith.addf %196, %199 : vector<8x128xf32>
    %201 = vector.extract_strided_slice %144 {offsets = [112, 0], sizes = [8, 128], strides = [1, 1]} : vector<128x128xf32> to vector<8x128xf32>
    %202 = arith.addf %198, %201 : vector<8x128xf32>
    %203 = arith.mulf %201, %201 : vector<8x128xf32>
    %204 = arith.addf %200, %203 : vector<8x128xf32>
    %205 = vector.extract_strided_slice %144 {offsets = [120, 0], sizes = [8, 128], strides = [1, 1]} : vector<128x128xf32> to vector<8x128xf32>
    %206 = arith.addf %202, %205 : vector<8x128xf32>
    %207 = arith.mulf %205, %205 : vector<8x128xf32>
    %208 = arith.addf %204, %207 : vector<8x128xf32>
    %c3_i32 = arith.constant 3 : i32
    %c128_i32_9 = arith.constant 128 : i32
    %209 = arith.muli %c3_i32, %c128_i32_9 : i32
    %210 = tpu.assume_multiple %209, 128 : i32
    %211 = arith.index_cast %210 : i32 to index
    %c0_10 = arith.constant 0 : index
    %212 = vector.load %arg1[%211, %c0_10] : memref<512x36xbf16, #tpu.memory_space<vmem>>, vector<128x36xbf16>
    %cst_11 = arith.constant dense<0.000000e+00> : vector<128x128xf32>
    %213 = tpu.matmul %212, %0, %cst_11 {dimension_numbers = #tpu.dot_dimension_numbers<[1], [0], [0], [1], [0, 0, 1, 1], [], []>} : vector<128x36xbf16>, vector<36x128xbf16>, vector<128x128xf32> -> vector<128x128xf32>
    %214 = vector.extract_strided_slice %213 {offsets = [0, 0], sizes = [8, 128], strides = [1, 1]} : vector<128x128xf32> to vector<8x128xf32>
    %215 = arith.addf %206, %214 : vector<8x128xf32>
    %216 = arith.mulf %214, %214 : vector<8x128xf32>
    %217 = arith.addf %208, %216 : vector<8x128xf32>
    %218 = vector.extract_strided_slice %213 {offsets = [8, 0], sizes = [8, 128], strides = [1, 1]} : vector<128x128xf32> to vector<8x128xf32>
    %219 = arith.addf %215, %218 : vector<8x128xf32>
    %220 = arith.mulf %218, %218 : vector<8x128xf32>
    %221 = arith.addf %217, %220 : vector<8x128xf32>
    %222 = vector.extract_strided_slice %213 {offsets = [16, 0], sizes = [8, 128], strides = [1, 1]} : vector<128x128xf32> to vector<8x128xf32>
    %223 = arith.addf %219, %222 : vector<8x128xf32>
    %224 = arith.mulf %222, %222 : vector<8x128xf32>
    %225 = arith.addf %221, %224 : vector<8x128xf32>
    %226 = vector.extract_strided_slice %213 {offsets = [24, 0], sizes = [8, 128], strides = [1, 1]} : vector<128x128xf32> to vector<8x128xf32>
    %227 = arith.addf %223, %226 : vector<8x128xf32>
    %228 = arith.mulf %226, %226 : vector<8x128xf32>
    %229 = arith.addf %225, %228 : vector<8x128xf32>
    %230 = vector.extract_strided_slice %213 {offsets = [32, 0], sizes = [8, 128], strides = [1, 1]} : vector<128x128xf32> to vector<8x128xf32>
    %231 = arith.addf %227, %230 : vector<8x128xf32>
    %232 = arith.mulf %230, %230 : vector<8x128xf32>
    %233 = arith.addf %229, %232 : vector<8x128xf32>
    %234 = vector.extract_strided_slice %213 {offsets = [40, 0], sizes = [8, 128], strides = [1, 1]} : vector<128x128xf32> to vector<8x128xf32>
    %235 = arith.addf %231, %234 : vector<8x128xf32>
    %236 = arith.mulf %234, %234 : vector<8x128xf32>
    %237 = arith.addf %233, %236 : vector<8x128xf32>
    %238 = vector.extract_strided_slice %213 {offsets = [48, 0], sizes = [8, 128], strides = [1, 1]} : vector<128x128xf32> to vector<8x128xf32>
    %239 = arith.addf %235, %238 : vector<8x128xf32>
    %240 = arith.mulf %238, %238 : vector<8x128xf32>
    %241 = arith.addf %237, %240 : vector<8x128xf32>
    %242 = vector.extract_strided_slice %213 {offsets = [56, 0], sizes = [8, 128], strides = [1, 1]} : vector<128x128xf32> to vector<8x128xf32>
    %243 = arith.addf %239, %242 : vector<8x128xf32>
    %244 = arith.mulf %242, %242 : vector<8x128xf32>
    %245 = arith.addf %241, %244 : vector<8x128xf32>
    %246 = vector.extract_strided_slice %213 {offsets = [64, 0], sizes = [8, 128], strides = [1, 1]} : vector<128x128xf32> to vector<8x128xf32>
    %247 = arith.addf %243, %246 : vector<8x128xf32>
    %248 = arith.mulf %246, %246 : vector<8x128xf32>
    %249 = arith.addf %245, %248 : vector<8x128xf32>
    %250 = vector.extract_strided_slice %213 {offsets = [72, 0], sizes = [8, 128], strides = [1, 1]} : vector<128x128xf32> to vector<8x128xf32>
    %251 = arith.addf %247, %250 : vector<8x128xf32>
    %252 = arith.mulf %250, %250 : vector<8x128xf32>
    %253 = arith.addf %249, %252 : vector<8x128xf32>
    %254 = vector.extract_strided_slice %213 {offsets = [80, 0], sizes = [8, 128], strides = [1, 1]} : vector<128x128xf32> to vector<8x128xf32>
    %255 = arith.addf %251, %254 : vector<8x128xf32>
    %256 = arith.mulf %254, %254 : vector<8x128xf32>
    %257 = arith.addf %253, %256 : vector<8x128xf32>
    %258 = vector.extract_strided_slice %213 {offsets = [88, 0], sizes = [8, 128], strides = [1, 1]} : vector<128x128xf32> to vector<8x128xf32>
    %259 = arith.addf %255, %258 : vector<8x128xf32>
    %260 = arith.mulf %258, %258 : vector<8x128xf32>
    %261 = arith.addf %257, %260 : vector<8x128xf32>
    %262 = vector.extract_strided_slice %213 {offsets = [96, 0], sizes = [8, 128], strides = [1, 1]} : vector<128x128xf32> to vector<8x128xf32>
    %263 = arith.addf %259, %262 : vector<8x128xf32>
    %264 = arith.mulf %262, %262 : vector<8x128xf32>
    %265 = arith.addf %261, %264 : vector<8x128xf32>
    %266 = vector.extract_strided_slice %213 {offsets = [104, 0], sizes = [8, 128], strides = [1, 1]} : vector<128x128xf32> to vector<8x128xf32>
    %267 = arith.addf %263, %266 : vector<8x128xf32>
    %268 = arith.mulf %266, %266 : vector<8x128xf32>
    %269 = arith.addf %265, %268 : vector<8x128xf32>
    %270 = vector.extract_strided_slice %213 {offsets = [112, 0], sizes = [8, 128], strides = [1, 1]} : vector<128x128xf32> to vector<8x128xf32>
    %271 = arith.addf %267, %270 : vector<8x128xf32>
    %272 = arith.mulf %270, %270 : vector<8x128xf32>
    %273 = arith.addf %269, %272 : vector<8x128xf32>
    %274 = vector.extract_strided_slice %213 {offsets = [120, 0], sizes = [8, 128], strides = [1, 1]} : vector<128x128xf32> to vector<8x128xf32>
    %275 = arith.addf %271, %274 : vector<8x128xf32>
    %276 = arith.mulf %274, %274 : vector<8x128xf32>
    %277 = arith.addf %273, %276 : vector<8x128xf32>
    %c4_i32 = arith.constant 4 : i32
    %c0_12 = arith.constant 0 : index
    %c0_13 = arith.constant 0 : index
    %278 = vector.load %arg3[%c0_12, %c0_13] : memref<8x128xf32, #tpu.memory_space<vmem>>, vector<8x128xf32>
    tpu.vector_store %arg3[%c0_12, %c0_13], %275 {strides = array<i32>} : memref<8x128xf32, #tpu.memory_space<vmem>>, vector<8x128xf32>,
    %c0_14 = arith.constant 0 : index
    %c0_15 = arith.constant 0 : index
    %279 = vector.load %arg4[%c0_14, %c0_15] : memref<8x128xf32, #tpu.memory_space<vmem>>, vector<8x128xf32>
    tpu.vector_store %arg4[%c0_14, %c0_15], %277 {strides = array<i32>} : memref<8x128xf32, #tpu.memory_space<vmem>>, vector<8x128xf32>,
    return
  }
  func.func @transform_0(%arg0: i32) -> (i32, i32) {
    %c0_i32 = arith.constant 0 : i32
    %c0_i32_0 = arith.constant 0 : i32
    return %arg0, %c0_i32 : i32, i32
  }
  func.func @transform_1(%arg0: i32) -> (i32, i32) {
    %c0_i32 = arith.constant 0 : i32
    %c0_i32_0 = arith.constant 0 : i32
    %c0_i32_1 = arith.constant 0 : i32
    return %c0_i32, %c0_i32_0 : i32, i32
  }
  func.func @transform_2(%arg0: i32) -> (i32, i32) {
    %c0_i32 = arith.constant 0 : i32
    %c0_i32_0 = arith.constant 0 : i32
    return %arg0, %c0_i32 : i32, i32
  }
  func.func @transform_3(%arg0: i32) -> (i32, i32) {
    %c0_i32 = arith.constant 0 : i32
    %c0_i32_0 = arith.constant 0 : i32
    return %arg0, %c0_i32 : i32, i32
  }
}

module attributes {stable_mosaic.version = 11 : i64} {
  func.func @conv_bn_relu_kernel(%arg0: i32, %arg1: memref<512x36xbf16, #tpu.memory_space<vmem>>, %arg2: memref<36x128xbf16, #tpu.memory_space<vmem>>, %arg3: memref<1x128xf32, #tpu.memory_space<vmem>>, %arg4: memref<1x128xf32, #tpu.memory_space<vmem>>, %arg5: memref<512x8xf32, #tpu.memory_space<vmem>>) attributes {dimension_semantics = [#tpu.dimension_semantics<parallel>], iteration_bounds = array<i64: 1>, scalar_prefetch = 0 : i64, scratch_operands = 0 : i64, tpu.core_type = #tpu.core_type<tc>, window_params = [{transform_indices = @transform_0, window_bounds = array<i64: 512, 36>}, {pipeline_mode = #tpu.pipeline_mode<synchronous>, transform_indices = @transform_1, window_bounds = array<i64: 36, 128>}, {pipeline_mode = #tpu.pipeline_mode<synchronous>, transform_indices = @transform_2, window_bounds = array<i64: 1, 128>}, {pipeline_mode = #tpu.pipeline_mode<synchronous>, transform_indices = @transform_3, window_bounds = array<i64: 1, 128>}, {transform_indices = @transform_4, window_bounds = array<i64: 512, 8>}]} {
    %c0 = arith.constant 0 : index
    %c0_0 = arith.constant 0 : index
    %0 = vector.load %arg2[%c0, %c0_0] : memref<36x128xbf16, #tpu.memory_space<vmem>>, vector<36x128xbf16>
    %c0_1 = arith.constant 0 : index
    %c0_2 = arith.constant 0 : index
    %1 = vector.load %arg3[%c0_1, %c0_2] : memref<1x128xf32, #tpu.memory_space<vmem>>, vector<1x128xf32>
    %c0_3 = arith.constant 0 : index
    %c0_4 = arith.constant 0 : index
    %2 = vector.load %arg4[%c0_3, %c0_4] : memref<1x128xf32, #tpu.memory_space<vmem>>, vector<1x128xf32>
    %c0_i32 = arith.constant 0 : i32
    %c128_i32 = arith.constant 128 : i32
    %3 = arith.muli %c0_i32, %c128_i32 : i32
    %4 = tpu.assume_multiple %3, 128 : i32
    %5 = arith.index_cast %4 : i32 to index
    %c0_5 = arith.constant 0 : index
    %6 = vector.load %arg1[%5, %c0_5] : memref<512x36xbf16, #tpu.memory_space<vmem>>, vector<128x36xbf16>
    %cst = arith.constant dense<0.000000e+00> : vector<128x128xf32>
    %7 = tpu.matmul %6, %0, %cst {dimension_numbers = #tpu.dot_dimension_numbers<[1], [0], [0], [1], [0, 0, 1, 1], [], []>} : vector<128x36xbf16>, vector<36x128xbf16>, vector<128x128xf32> -> vector<128x128xf32>
    %8 = vector.broadcast %1 : vector<1x128xf32> to vector<128x128xf32>
    %9 = arith.mulf %7, %8 : vector<128x128xf32>
    %10 = vector.broadcast %2 : vector<1x128xf32> to vector<128x128xf32>
    %11 = arith.addf %9, %10 : vector<128x128xf32>
    %cst_6 = arith.constant 0.000000e+00 : f32
    %12 = vector.broadcast %cst_6 : f32 to vector<128x128xf32>
    %13 = arith.maximumf %11, %12 : vector<128x128xf32>
    %14 = vector.extract_strided_slice %13 {offsets = [0, 0], sizes = [128, 8], strides = [1, 1]} : vector<128x128xf32> to vector<128x8xf32>
    %15 = arith.index_cast %4 : i32 to index
    %c0_7 = arith.constant 0 : index
    %16 = vector.load %arg5[%15, %c0_7] : memref<512x8xf32, #tpu.memory_space<vmem>>, vector<128x8xf32>
    tpu.vector_store %arg5[%15, %c0_7], %14 {strides = array<i32>} : memref<512x8xf32, #tpu.memory_space<vmem>>, vector<128x8xf32>,
    %c1_i32 = arith.constant 1 : i32
    %c128_i32_8 = arith.constant 128 : i32
    %17 = arith.muli %c1_i32, %c128_i32_8 : i32
    %18 = tpu.assume_multiple %17, 128 : i32
    %19 = arith.index_cast %18 : i32 to index
    %c0_9 = arith.constant 0 : index
    %20 = vector.load %arg1[%19, %c0_9] : memref<512x36xbf16, #tpu.memory_space<vmem>>, vector<128x36xbf16>
    %cst_10 = arith.constant dense<0.000000e+00> : vector<128x128xf32>
    %21 = tpu.matmul %20, %0, %cst_10 {dimension_numbers = #tpu.dot_dimension_numbers<[1], [0], [0], [1], [0, 0, 1, 1], [], []>} : vector<128x36xbf16>, vector<36x128xbf16>, vector<128x128xf32> -> vector<128x128xf32>
    %22 = vector.broadcast %1 : vector<1x128xf32> to vector<128x128xf32>
    %23 = arith.mulf %21, %22 : vector<128x128xf32>
    %24 = vector.broadcast %2 : vector<1x128xf32> to vector<128x128xf32>
    %25 = arith.addf %23, %24 : vector<128x128xf32>
    %cst_11 = arith.constant 0.000000e+00 : f32
    %26 = vector.broadcast %cst_11 : f32 to vector<128x128xf32>
    %27 = arith.maximumf %25, %26 : vector<128x128xf32>
    %28 = vector.extract_strided_slice %27 {offsets = [0, 0], sizes = [128, 8], strides = [1, 1]} : vector<128x128xf32> to vector<128x8xf32>
    %29 = arith.index_cast %18 : i32 to index
    %c0_12 = arith.constant 0 : index
    %30 = vector.load %arg5[%29, %c0_12] : memref<512x8xf32, #tpu.memory_space<vmem>>, vector<128x8xf32>
    tpu.vector_store %arg5[%29, %c0_12], %28 {strides = array<i32>} : memref<512x8xf32, #tpu.memory_space<vmem>>, vector<128x8xf32>,
    %c2_i32 = arith.constant 2 : i32
    %c128_i32_13 = arith.constant 128 : i32
    %31 = arith.muli %c2_i32, %c128_i32_13 : i32
    %32 = tpu.assume_multiple %31, 128 : i32
    %33 = arith.index_cast %32 : i32 to index
    %c0_14 = arith.constant 0 : index
    %34 = vector.load %arg1[%33, %c0_14] : memref<512x36xbf16, #tpu.memory_space<vmem>>, vector<128x36xbf16>
    %cst_15 = arith.constant dense<0.000000e+00> : vector<128x128xf32>
    %35 = tpu.matmul %34, %0, %cst_15 {dimension_numbers = #tpu.dot_dimension_numbers<[1], [0], [0], [1], [0, 0, 1, 1], [], []>} : vector<128x36xbf16>, vector<36x128xbf16>, vector<128x128xf32> -> vector<128x128xf32>
    %36 = vector.broadcast %1 : vector<1x128xf32> to vector<128x128xf32>
    %37 = arith.mulf %35, %36 : vector<128x128xf32>
    %38 = vector.broadcast %2 : vector<1x128xf32> to vector<128x128xf32>
    %39 = arith.addf %37, %38 : vector<128x128xf32>
    %cst_16 = arith.constant 0.000000e+00 : f32
    %40 = vector.broadcast %cst_16 : f32 to vector<128x128xf32>
    %41 = arith.maximumf %39, %40 : vector<128x128xf32>
    %42 = vector.extract_strided_slice %41 {offsets = [0, 0], sizes = [128, 8], strides = [1, 1]} : vector<128x128xf32> to vector<128x8xf32>
    %43 = arith.index_cast %32 : i32 to index
    %c0_17 = arith.constant 0 : index
    %44 = vector.load %arg5[%43, %c0_17] : memref<512x8xf32, #tpu.memory_space<vmem>>, vector<128x8xf32>
    tpu.vector_store %arg5[%43, %c0_17], %42 {strides = array<i32>} : memref<512x8xf32, #tpu.memory_space<vmem>>, vector<128x8xf32>,
    %c3_i32 = arith.constant 3 : i32
    %c128_i32_18 = arith.constant 128 : i32
    %45 = arith.muli %c3_i32, %c128_i32_18 : i32
    %46 = tpu.assume_multiple %45, 128 : i32
    %47 = arith.index_cast %46 : i32 to index
    %c0_19 = arith.constant 0 : index
    %48 = vector.load %arg1[%47, %c0_19] : memref<512x36xbf16, #tpu.memory_space<vmem>>, vector<128x36xbf16>
    %cst_20 = arith.constant dense<0.000000e+00> : vector<128x128xf32>
    %49 = tpu.matmul %48, %0, %cst_20 {dimension_numbers = #tpu.dot_dimension_numbers<[1], [0], [0], [1], [0, 0, 1, 1], [], []>} : vector<128x36xbf16>, vector<36x128xbf16>, vector<128x128xf32> -> vector<128x128xf32>
    %50 = vector.broadcast %1 : vector<1x128xf32> to vector<128x128xf32>
    %51 = arith.mulf %49, %50 : vector<128x128xf32>
    %52 = vector.broadcast %2 : vector<1x128xf32> to vector<128x128xf32>
    %53 = arith.addf %51, %52 : vector<128x128xf32>
    %cst_21 = arith.constant 0.000000e+00 : f32
    %54 = vector.broadcast %cst_21 : f32 to vector<128x128xf32>
    %55 = arith.maximumf %53, %54 : vector<128x128xf32>
    %56 = vector.extract_strided_slice %55 {offsets = [0, 0], sizes = [128, 8], strides = [1, 1]} : vector<128x128xf32> to vector<128x8xf32>
    %57 = arith.index_cast %46 : i32 to index
    %c0_22 = arith.constant 0 : index
    %58 = vector.load %arg5[%57, %c0_22] : memref<512x8xf32, #tpu.memory_space<vmem>>, vector<128x8xf32>
    tpu.vector_store %arg5[%57, %c0_22], %56 {strides = array<i32>} : memref<512x8xf32, #tpu.memory_space<vmem>>, vector<128x8xf32>,
    %c4_i32 = arith.constant 4 : i32
    return
  }
  func.func @transform_0(%arg0: i32) -> (i32, i32) {
    %c0_i32 = arith.constant 0 : i32
    %c0_i32_0 = arith.constant 0 : i32
    return %arg0, %c0_i32 : i32, i32
  }
  func.func @transform_1(%arg0: i32) -> (i32, i32) {
    %c0_i32 = arith.constant 0 : i32
    %c0_i32_0 = arith.constant 0 : i32
    %c0_i32_1 = arith.constant 0 : i32
    return %c0_i32, %c0_i32_0 : i32, i32
  }
  func.func @transform_2(%arg0: i32) -> (i32, i32) {
    %c0_i32 = arith.constant 0 : i32
    %c0_i32_0 = arith.constant 0 : i32
    %c0_i32_1 = arith.constant 0 : i32
    return %c0_i32, %c0_i32_0 : i32, i32
  }
  func.func @transform_3(%arg0: i32) -> (i32, i32) {
    %c0_i32 = arith.constant 0 : i32
    %c0_i32_0 = arith.constant 0 : i32
    %c0_i32_1 = arith.constant 0 : i32
    return %c0_i32, %c0_i32_0 : i32, i32
  }
  func.func @transform_4(%arg0: i32) -> (i32, i32) {
    %c0_i32 = arith.constant 0 : i32
    %c0_i32_0 = arith.constant 0 : i32
    return %arg0, %c0_i32 : i32, i32
  }
}

</mosaic_0001>

<bundles_post_ra>
// kernel: conv_batch_relu.3
= control target key start
LH: loop header
LB: loop body
LE: loop exit
PB: predicated region body
PF: predicated region fallthrough
CT: control target
= control target key end

     0   :  { %vm121_vm0 = vcmask 1041408   ;;  %vm96_vm1 = vcmask 293888   ;;  %vm282_vm2 = vcmask 64512   ;;  %s1929_s1 = inlined_call_operand.vmem [shape: bf16[36,128], index: 1, kind: input, shape index: {}]   ;;  %s1930_s0 = inlined_call_operand.vmem [shape: bf16[512,36], index: 0, kind: input, shape index: {}]   ;;  %s1931_s2 = inlined_call_operand.vmem [shape: f32[1,128], index: 2, kind: input, shape index: {}]   ;;  %s1932_s3 = inlined_call_operand.vmem [shape: f32[1,128], index: 3, kind: input, shape index: {}]   ;;  %s1933_s4 = inlined_call_operand.vmem [shape: f32[512,8], index: 4, kind: output, shape index: {}]  }
   0x1   :  { %v1334_v0 = vld [vmem:[%s1929_s1 + $0x8] sm:$0xff]   ;;  %v1335_v1 = vld [vmem:[%s1929_s1 + $0x10] ss:$0 sps:$4 sm:$0x33]   ;;  %v1336_v2 = vld [vmem:[%s1930_s0] sm:$0xff]  }
   0x2   :  { %1329 = vmatprep.subr.msk.bf16.mxu0 %vm121_vm0, %v1335_v1  ;;  %1330 = vmatprep.subr.msk.bf16.mxu1 %vm121_vm0, %v1335_v1  ;;  %v123_v3 = vsel %vm121_vm0, %v1335_v1, 0  ;;  %v1337_v4 = vld [vmem:[%s1930_s0 + $0x40] sm:$0xff]   ;;  %v1338_v6 = vld [vmem:[%s1930_s0 + $0x8] sm:$0xff]   ;;  %v1340_v8 = vld [vmem:[%s1930_s0 + $0x10] sm:$0xff]  }
   0x3   :  { %1242 = vmatpush3.bf16.msra.mxu0 %v123_v3  ;;  %1264 = vmatpush3.bf16.msra.mxu1 %v123_v3  ;;  %v1333_v5 = vld [vmem:[%s1929_s1] sm:$0xff]   ;;  %v1339_v7 = vld [vmem:[%s1930_s0 + $0x48] sm:$0xff]   ;;  %v1341_v9 = vld [vmem:[%s1930_s0 + $0x50] sm:$0xff]  }
   0x4   :  { %1243 = vmatprep.subr.bf16.mxu0 %v1334_v0  ;;  %1265 = vmatprep.subr.bf16.mxu1 %v1334_v0  ;;  %v1342_v10 = vld [vmem:[%s1930_s0 + $0x18] sm:$0xff]   ;;  %v1344_v12 = vld [vmem:[%s1930_s0 + $0x20] sm:$0xff]   ;;  %v1346_v14 = vld [vmem:[%s1930_s0 + $0x28] sm:$0xff]  }
   0x5   :  { %1247 = vmatprep.mubr.msk.bf16.mxu0 %vm96_vm1, %v1336_v2  ;;  %1269 = vmatprep.mubr.msk.bf16.mxu1 %vm96_vm1, %v1337_v4  ;;  %v1343_v11 = vld [vmem:[%s1930_s0 + $0x58] sm:$0xff]   ;;  %v1345_v13 = vld [vmem:[%s1930_s0 + $0x60] sm:$0xff]   ;;  %v1347_v15 = vld [vmem:[%s1930_s0 + $0x68] sm:$0xff]  }
   0x6   :  { %v1348_v16 = vld [vmem:[%s1930_s0 + $0x30] sm:$0xff]   ;;  %v1350_v18 = vld [vmem:[%s1930_s0 + $0x38] sm:$0xff]   ;;  %v1352_v20 = vld [vmem:[%s1930_s0 + $0x80] sm:$0xff]  }
   0x7   :  { %1244 = vmatpush3.bf16.msra.mxu0 %v1334_v0  ;;  %1266 = vmatpush3.bf16.msra.mxu1 %v1334_v0  ;;  %v1349_v17 = vld [vmem:[%s1930_s0 + $0x70] sm:$0xff]   ;;  %v1351_v19 = vld [vmem:[%s1930_s0 + $0x78] sm:$0xff]   ;;  %v1353_v21 = vld [vmem:[%s1930_s0 + $0xc0] sm:$0xff]  }
   0x8   :  { %1245 = vmatprep.subr.bf16.mxu0 %v1333_v5  ;;  %1267 = vmatprep.subr.bf16.mxu1 %v1333_v5  ;;  %v1354_v22 = vld [vmem:[%s1930_s0 + $0x88] sm:$0xff]   ;;  %v1356_v24 = vld [vmem:[%s1930_s0 + $0x90] sm:$0xff]   ;;  %v1358_v26 = vld [vmem:[%s1930_s0 + $0x98] sm:$0xff]  }
   0x9   :  { %v1355_v23 = vld [vmem:[%s1930_s0 + $0xc8] sm:$0xff]   ;;  %v1357_v25 = vld [vmem:[%s1930_s0 + $0xd0] sm:$0xff]   ;;  %v1359_v27 = vld [vmem:[%s1930_s0 + $0xd8] sm:$0xff]  }
   0xa   :  { %v1360_v28 = vld [vmem:[%s1930_s0 + $0xa0] sm:$0xff]   ;;  %v1362_v30 = vld [vmem:[%s1930_s0 + $0xa8] sm:$0xff]   ;;  %v1364_v32 = vld [vmem:[%s1930_s0 + $0xb0] sm:$0xff]  }
   0xb   :  { %1246 = vmatpush3.bf16.msra.mxu0 %v1333_v5  ;;  %1268 = vmatpush3.bf16.msra.mxu1 %v1333_v5  ;;  %v1361_v29 = vld [vmem:[%s1930_s0 + $0xe0] sm:$0xff]   ;;  %v1363_v31 = vld [vmem:[%s1930_s0 + $0xe8] sm:$0xff]   ;;  %v1365_v33 = vld [vmem:[%s1930_s0 + $0xf0] sm:$0xff]  }
   0xc   :  { %1331 = vmatprep.subr.msk.bf16.mxu0 %vm121_vm0, %v1335_v1  ;;  %1332 = vmatprep.subr.msk.bf16.mxu1 %vm121_vm0, %v1335_v1  ;;  %v1366_v34 = vld [vmem:[%s1930_s0 + $0xb8] sm:$0xff]   ;;  %v1538_v36 = vld [vmem:[%s1931_s2] ss:$0 sm:$0xff] }
   0xd   :  { %v1367_v35 = vld [vmem:[%s1930_s0 + $0xf8] sm:$0xff]   ;;  %v1543_v37 = vld [vmem:[%s1932_s3] ss:$0 sm:$0xff] }
   0xe   :  { %1248 = vmatmul.mubr.msk.bf16.vlgmr.msra.gmra.mxu0 %vm96_vm1, %v1338_v6  ;;  %1270 = vmatmul.mubr.msk.bf16.vlgmr.msra.gmra.mxu1 %vm96_vm1, %v1339_v7 }
   0xf   :  { %1286 = vmatpush3.bf16.msra.mxu0 %v123_v3  ;;  %1308 = vmatpush3.bf16.msra.mxu1 %v123_v3 }
  0x10   :  { %1251 = vmatprep.mubr.msk.bf16.mxu0 %vm96_vm1, %v1340_v8  ;;  %1273 = vmatprep.mubr.msk.bf16.mxu1 %vm96_vm1, %v1341_v9 }
  0x11   :  { %1287 = vmatprep.subr.bf16.mxu0 %v1334_v0  ;;  %1309 = vmatprep.subr.bf16.mxu1 %v1334_v0 }
  0x13   :  { %1288 = vmatpush3.bf16.msra.mxu0 %v1334_v0  ;;  %1310 = vmatpush3.bf16.msra.mxu1 %v1334_v0 }
  0x14   :  { %1289 = vmatprep.subr.bf16.mxu0 %v1333_v5  ;;  %1311 = vmatprep.subr.bf16.mxu1 %v1333_v5 }
  0x16   :  { %1252 = vmatmul.mubr.msk.bf16.gmra.mxu0 %vm96_vm1, %v1342_v10  ;;  %1274 = vmatmul.mubr.msk.bf16.gmra.mxu1 %vm96_vm1, %v1343_v11 }
  0x17   :  { %1255 = vmatprep.mubr.msk.bf16.mxu0 %vm96_vm1, %v1344_v12  ;;  %1277 = vmatprep.mubr.msk.bf16.mxu1 %vm96_vm1, %v1345_v13 }
  0x18   :  { %1290 = vmatpush3.bf16.msra.mxu0 %v1333_v5  ;;  %1312 = vmatpush3.bf16.msra.mxu1 %v1333_v5 }
  0x1e   :  { %1256 = vmatmul.mubr.msk.bf16.gmra.mxu0 %vm96_vm1, %v1346_v14  ;;  %1278 = vmatmul.mubr.msk.bf16.gmra.mxu1 %vm96_vm1, %v1347_v15 }
  0x1f   :  { %1259 = vmatprep.mubr.msk.bf16.mxu0 %vm96_vm1, %v1348_v16  ;;  %1281 = vmatprep.mubr.msk.bf16.mxu1 %vm96_vm1, %v1349_v17 }
  0x26   :  { %1260 = vmatmul.mubr.msk.bf16.gmra.mxu0 %vm96_vm1, %v1350_v18  ;;  %1282 = vmatmul.mubr.msk.bf16.gmra.mxu1 %vm96_vm1, %v1351_v19 }
  0x27   :  { %1291 = vmatprep.mubr.msk.bf16.mxu0 %vm96_vm1, %v1352_v20  ;;  %1313 = vmatprep.mubr.msk.bf16.mxu1 %vm96_vm1, %v1353_v21 }
  0x2e   :  { %1292 = vmatmul.mubr.msk.bf16.vlgmr.msra.gmra.mxu0 %vm96_vm1, %v1354_v22  ;;  %1314 = vmatmul.mubr.msk.bf16.vlgmr.msra.gmra.mxu1 %vm96_vm1, %v1355_v23 }
  0x2f   :  { %1295 = vmatprep.mubr.msk.bf16.mxu0 %vm96_vm1, %v1356_v24  ;;  %1317 = vmatprep.mubr.msk.bf16.mxu1 %vm96_vm1, %v1357_v25 }
  0x36   :  { %1296 = vmatmul.mubr.msk.bf16.gmra.mxu0 %vm96_vm1, %v1358_v26  ;;  %1318 = vmatmul.mubr.msk.bf16.gmra.mxu1 %vm96_vm1, %v1359_v27 }
  0x37   :  { %1299 = vmatprep.mubr.msk.bf16.mxu0 %vm96_vm1, %v1360_v28  ;;  %1321 = vmatprep.mubr.msk.bf16.mxu1 %vm96_vm1, %v1361_v29 }
  0x3e   :  { %1300 = vmatmul.mubr.msk.bf16.gmra.mxu0 %vm96_vm1, %v1362_v30  ;;  %1322 = vmatmul.mubr.msk.bf16.gmra.mxu1 %vm96_vm1, %v1363_v31 }
  0x3f   :  { %1303 = vmatprep.mubr.msk.bf16.mxu0 %vm96_vm1, %v1364_v32  ;;  %1325 = vmatprep.mubr.msk.bf16.mxu1 %vm96_vm1, %v1365_v33 }
  0x46   :  { %1304 = vmatmul.mubr.msk.bf16.gmra.mxu0 %vm96_vm1, %v1366_v34  ;;  %1326 = vmatmul.mubr.msk.bf16.gmra.mxu1 %vm96_vm1, %v1367_v35 }
  0xce   :  { %v1249_v38 = vpop.f32.mrf.mxu0  ;;  %v1271_v39 = vpop.f32.mrf.mxu1 }
  0xcf   :  { %v230_v40 = vmul.f32 %v1249_v38, %v1538_v36  ;;  %v479_v41 = vmul.f32 %v1271_v39, %v1538_v36 }
  0xd0   :  { %v159_v42 = vpop.f32.mrf.mxu0  ;;  %v414_v43 = vpop.f32.mrf.mxu1 }
  0xd1   :  { %v252_v44 = vadd.f32 %v1543_v37, %v230_v40  ;;  %v495_v45 = vadd.f32 %v1543_v37, %v479_v41  ;;  %v228_v46 = vmul.f32 %v1538_v36, %v159_v42  ;;  %v477_v47 = vmul.f32 %v1538_v36, %v414_v43 }
  0xd2   :  { %v1250_v48 = vpop.f32.mrf.mxu0  ;;  %v1272_v49 = vpop.f32.mrf.mxu1 }
  0xd3   :  { %v268_v50 = vmax.f32 %v252_v44, 0.0  ;;  %v511_v51 = vmax.f32 %v495_v45, 0.0  ;;  %v250_v52 = vadd.f32 %v1543_v37, %v228_v46  ;;  %v493_v53 = vadd.f32 %v1543_v37, %v477_v47 }
  0xd4   :  { %v231_v54 = vmul.f32 %v1250_v48, %v1538_v36  ;;  %v480_v55 = vmul.f32 %v1272_v49, %v1538_v36  ;;  %v162_v56 = vpop.f32.mrf.mxu0  ;;  %v417_v57 = vpop.f32.mrf.mxu1 }
  0xd5   :  { %285 = vst.msk [vmem:[%s1933_s4 + $0x10] sm:$0xff] %vm282_vm2, %v268_v50  ;;  %1087 = vst.msk [vmem:[%s1933_s4 + $0x90] sm:$0xff] %vm282_vm2, %v511_v51  ;;  %v266_v58 = vmax.f32 %v250_v52, 0.0  ;;  %v509_v59 = vmax.f32 %v493_v53, 0.0  ;;  %v229_v60 = vmul.f32 %v1538_v36, %v162_v56  ;;  %v478_v61 = vmul.f32 %v1538_v36, %v417_v57 }
  0xd6   :  { %v253_v62 = vadd.f32 %v1543_v37, %v231_v54  ;;  %v496_v63 = vadd.f32 %v1543_v37, %v480_v55  ;;  %v1253_v0 = vpop.f32.mrf.mxu0  ;;  %v1275_v1 = vpop.f32.mrf.mxu1 }
  0xd7   :  { %283 = vst.msk [vmem:[%s1933_s4] sm:$0xff] %vm282_vm2, %v266_v58  ;;  %1085 = vst.msk [vmem:[%s1933_s4 + $0x80] sm:$0xff] %vm282_vm2, %v509_v59  ;;  %v251_v2 = vadd.f32 %v1543_v37, %v229_v60  ;;  %v494_v3 = vadd.f32 %v1543_v37, %v478_v61  ;;  %v234_v4 = vmul.f32 %v1253_v0, %v1538_v36 }
  0xd8   :  { %v483_v5 = vmul.f32 %v1275_v1, %v1538_v36  ;;  %v269_v6 = vmax.f32 %v253_v62, 0.0  ;;  %v512_v7 = vmax.f32 %v496_v63, 0.0  ;;  %v175_v8 = vpop.f32.mrf.mxu0  ;;  %v430_v9 = vpop.f32.mrf.mxu1 }
  0xd9   :  { %v267_v10 = vmax.f32 %v251_v2, 0.0  ;;  %v510_v11 = vmax.f32 %v494_v3, 0.0  ;;  %v256_v12 = vadd.f32 %v1543_v37, %v234_v4  ;;  %v232_v14 = vmul.f32 %v1538_v36, %v175_v8 }
  0xda   :  { %v499_v13 = vadd.f32 %v1543_v37, %v483_v5  ;;  %286 = vst.msk [vmem:[%s1933_s4 + $0x18] sm:$0xff] %vm282_vm2, %v269_v6  ;;  %1088 = vst.msk [vmem:[%s1933_s4 + $0x98] sm:$0xff] %vm282_vm2, %v512_v7  ;;  %v481_v15 = vmul.f32 %v1538_v36, %v430_v9  ;;  %v1254_v16 = vpop.f32.mrf.mxu0  ;;  %v1276_v17 = vpop.f32.mrf.mxu1 }
  0xdb   :  { %284 = vst.msk [vmem:[%s1933_s4 + $0x8] sm:$0xff] %vm282_vm2, %v267_v10  ;;  %1086 = vst.msk [vmem:[%s1933_s4 + $0x88] sm:$0xff] %vm282_vm2, %v510_v11  ;;  %v272_v18 = vmax.f32 %v256_v12, 0.0  ;;  %v235_v20 = vmul.f32 %v1254_v16, %v1538_v36  ;;  %v484_v21 = vmul.f32 %v1276_v17, %v1538_v36  ;;  %v254_v22 = vadd.f32 %v1543_v37, %v232_v14 }
  0xdc   :  { %v515_v19 = vmax.f32 %v499_v13, 0.0  ;;  %v497_v23 = vadd.f32 %v1543_v37, %v481_v15  ;;  %v178_v24 = vpop.f32.mrf.mxu0  ;;  %v433_v25 = vpop.f32.mrf.mxu1 }
  0xdd   :  { %289 = vst.msk [vmem:[%s1933_s4 + $0x30] sm:$0xff] %vm282_vm2, %v272_v18  ;;  %v257_v26 = vadd.f32 %v1543_v37, %v235_v20  ;;  %v500_v27 = vadd.f32 %v1543_v37, %v484_v21  ;;  %v233_v28 = vmul.f32 %v1538_v36, %v178_v24  ;;  %v482_v29 = vmul.f32 %v1538_v36, %v433_v25 }
  0xde   :  { %1091 = vst.msk [vmem:[%s1933_s4 + $0xb0] sm:$0xff] %vm282_vm2, %v515_v19  ;;  %v270_v30 = vmax.f32 %v254_v22, 0.0  ;;  %v513_v31 = vmax.f32 %v497_v23, 0.0  ;;  %v1257_v32 = vpop.f32.mrf.mxu0  ;;  %v1279_v33 = vpop.f32.mrf.mxu1 }
  0xdf   :  { %v273_v34 = vmax.f32 %v257_v26, 0.0  ;;  %v516_v35 = vmax.f32 %v500_v27, 0.0  ;;  %v255_v38 = vadd.f32 %v1543_v37, %v233_v28  ;;  %v498_v39 = vadd.f32 %v1543_v37, %v482_v29 }
  0xe0   :  { %287 = vst.msk [vmem:[%s1933_s4 + $0x20] sm:$0xff] %vm282_vm2, %v270_v30  ;;  %1089 = vst.msk [vmem:[%s1933_s4 + $0xa0] sm:$0xff] %vm282_vm2, %v513_v31  ;;  %v238_v40 = vmul.f32 %v1257_v32, %v1538_v36  ;;  %v487_v41 = vmul.f32 %v1279_v33, %v1538_v36  ;;  %v191_v42 = vpop.f32.mrf.mxu0  ;;  %v446_v43 = vpop.f32.mrf.mxu1 }
  0xe1   :  { %290 = vst.msk [vmem:[%s1933_s4 + $0x38] sm:$0xff] %vm282_vm2, %v273_v34  ;;  %1092 = vst.msk [vmem:[%s1933_s4 + $0xb8] sm:$0xff] %vm282_vm2, %v516_v35  ;;  %v271_v44 = vmax.f32 %v255_v38, 0.0  ;;  %v514_v45 = vmax.f32 %v498_v39, 0.0  ;;  %v236_v46 = vmul.f32 %v1538_v36, %v191_v42  ;;  %v485_v47 = vmul.f32 %v1538_v36, %v446_v43 }
  0xe2   :  { %v260_v48 = vadd.f32 %v1543_v37, %v238_v40  ;;  %v503_v49 = vadd.f32 %v1543_v37, %v487_v41  ;;  %v1258_v50 = vpop.f32.mrf.mxu0  ;;  %v1280_v51 = vpop.f32.mrf.mxu1 }
  0xe3   :  { %288 = vst.msk [vmem:[%s1933_s4 + $0x28] sm:$0xff] %vm282_vm2, %v271_v44  ;;  %1090 = vst.msk [vmem:[%s1933_s4 + $0xa8] sm:$0xff] %vm282_vm2, %v514_v45  ;;  %v258_v52 = vadd.f32 %v1543_v37, %v236_v46  ;;  %v501_v53 = vadd.f32 %v1543_v37, %v485_v47  ;;  %v239_v54 = vmul.f32 %v1258_v50, %v1538_v36 }
  0xe4   :  { %v488_v55 = vmul.f32 %v1280_v51, %v1538_v36  ;;  %v276_v56 = vmax.f32 %v260_v48, 0.0  ;;  %v519_v57 = vmax.f32 %v503_v49, 0.0  ;;  %v194_v58 = vpop.f32.mrf.mxu0  ;;  %v449_v59 = vpop.f32.mrf.mxu1 }
  0xe5   :  { %v274_v60 = vmax.f32 %v258_v52, 0.0  ;;  %v517_v61 = vmax.f32 %v501_v53, 0.0  ;;  %v261_v62 = vadd.f32 %v1543_v37, %v239_v54  ;;  %v237_v0 = vmul.f32 %v1538_v36, %v194_v58 }
  0xe6   :  { %v504_v63 = vadd.f32 %v1543_v37, %v488_v55  ;;  %293 = vst.msk [vmem:[%s1933_s4 + $0x50] sm:$0xff] %vm282_vm2, %v276_v56  ;;  %1095 = vst.msk [vmem:[%s1933_s4 + $0xd0] sm:$0xff] %vm282_vm2, %v519_v57  ;;  %v486_v1 = vmul.f32 %v1538_v36, %v449_v59  ;;  %v1261_v2 = vpop.f32.mrf.mxu0  ;;  %v1283_v3 = vpop.f32.mrf.mxu1 }
  0xe7   :  { %291 = vst.msk [vmem:[%s1933_s4 + $0x40] sm:$0xff] %vm282_vm2, %v274_v60  ;;  %1093 = vst.msk [vmem:[%s1933_s4 + $0xc0] sm:$0xff] %vm282_vm2, %v517_v61  ;;  %v277_v4 = vmax.f32 %v261_v62, 0.0  ;;  %v242_v6 = vmul.f32 %v1261_v2, %v1538_v36  ;;  %v491_v7 = vmul.f32 %v1283_v3, %v1538_v36  ;;  %v259_v8 = vadd.f32 %v1543_v37, %v237_v0 }
  0xe8   :  { %v520_v5 = vmax.f32 %v504_v63, 0.0  ;;  %v502_v9 = vadd.f32 %v1543_v37, %v486_v1  ;;  %v207_v10 = vpop.f32.mrf.mxu0  ;;  %v462_v11 = vpop.f32.mrf.mxu1 }
  0xe9   :  { %294 = vst.msk [vmem:[%s1933_s4 + $0x58] sm:$0xff] %vm282_vm2, %v277_v4  ;;  %v264_v12 = vadd.f32 %v1543_v37, %v242_v6  ;;  %v507_v13 = vadd.f32 %v1543_v37, %v491_v7  ;;  %v240_v14 = vmul.f32 %v1538_v36, %v207_v10  ;;  %v489_v15 = vmul.f32 %v1538_v36, %v462_v11 }
  0xea   :  { %1096 = vst.msk [vmem:[%s1933_s4 + $0xd8] sm:$0xff] %vm282_vm2, %v520_v5  ;;  %v275_v16 = vmax.f32 %v259_v8, 0.0  ;;  %v518_v17 = vmax.f32 %v502_v9, 0.0  ;;  %v1262_v18 = vpop.f32.mrf.mxu0  ;;  %v1284_v19 = vpop.f32.mrf.mxu1 }
  0xeb   :  { %v280_v20 = vmax.f32 %v264_v12, 0.0  ;;  %v523_v21 = vmax.f32 %v507_v13, 0.0  ;;  %v262_v22 = vadd.f32 %v1543_v37, %v240_v14  ;;  %v505_v23 = vadd.f32 %v1543_v37, %v489_v15 }
  0xec   :  { %292 = vst.msk [vmem:[%s1933_s4 + $0x48] sm:$0xff] %vm282_vm2, %v275_v16  ;;  %1094 = vst.msk [vmem:[%s1933_s4 + $0xc8] sm:$0xff] %vm282_vm2, %v518_v17  ;;  %v243_v24 = vmul.f32 %v1262_v18, %v1538_v36  ;;  %v492_v25 = vmul.f32 %v1284_v19, %v1538_v36  ;;  %v210_v26 = vpop.f32.mrf.mxu0  ;;  %v465_v27 = vpop.f32.mrf.mxu1 }
  0xed   :  { %297 = vst.msk [vmem:[%s1933_s4 + $0x70] sm:$0xff] %vm282_vm2, %v280_v20  ;;  %1099 = vst.msk [vmem:[%s1933_s4 + $0xf0] sm:$0xff] %vm282_vm2, %v523_v21  ;;  %v278_v28 = vmax.f32 %v262_v22, 0.0  ;;  %v521_v29 = vmax.f32 %v505_v23, 0.0  ;;  %v241_v30 = vmul.f32 %v1538_v36, %v210_v26  ;;  %v490_v31 = vmul.f32 %v1538_v36, %v465_v27 }
  0xee   :  { %v265_v32 = vadd.f32 %v1543_v37, %v243_v24  ;;  %v508_v33 = vadd.f32 %v1543_v37, %v492_v25  ;;  %v1293_v34 = vpop.f32.mrf.mxu0  ;;  %v1315_v35 = vpop.f32.mrf.mxu1 }
  0xef   :  { %295 = vst.msk [vmem:[%s1933_s4 + $0x60] sm:$0xff] %vm282_vm2, %v278_v28  ;;  %1097 = vst.msk [vmem:[%s1933_s4 + $0xe0] sm:$0xff] %vm282_vm2, %v521_v29  ;;  %v263_v38 = vadd.f32 %v1543_v37, %v241_v30  ;;  %v506_v39 = vadd.f32 %v1543_v37, %v490_v31  ;;  %v722_v40 = vmul.f32 %v1293_v34, %v1538_v36 }
  0xf0   :  { %v965_v41 = vmul.f32 %v1315_v35, %v1538_v36  ;;  %v281_v42 = vmax.f32 %v265_v32, 0.0  ;;  %v524_v43 = vmax.f32 %v508_v33, 0.0  ;;  %v657_v44 = vpop.f32.mrf.mxu0  ;;  %v900_v45 = vpop.f32.mrf.mxu1 }
  0xf1   :  { %v279_v46 = vmax.f32 %v263_v38, 0.0  ;;  %v522_v47 = vmax.f32 %v506_v39, 0.0  ;;  %v738_v48 = vadd.f32 %v1543_v37, %v722_v40  ;;  %v720_v50 = vmul.f32 %v1538_v36, %v657_v44 }
  0xf2   :  { %v981_v49 = vadd.f32 %v1543_v37, %v965_v41  ;;  %298 = vst.msk [vmem:[%s1933_s4 + $0x78] sm:$0xff] %vm282_vm2, %v281_v42  ;;  %1100 = vst.msk [vmem:[%s1933_s4 + $0xf8] sm:$0xff] %vm282_vm2, %v524_v43  ;;  %v963_v51 = vmul.f32 %v1538_v36, %v900_v45  ;;  %v1294_v52 = vpop.f32.mrf.mxu0  ;;  %v1316_v53 = vpop.f32.mrf.mxu1 }
  0xf3   :  { %296 = vst.msk [vmem:[%s1933_s4 + $0x68] sm:$0xff] %vm282_vm2, %v279_v46  ;;  %1098 = vst.msk [vmem:[%s1933_s4 + $0xe8] sm:$0xff] %vm282_vm2, %v522_v47  ;;  %v754_v54 = vmax.f32 %v738_v48, 0.0  ;;  %v723_v56 = vmul.f32 %v1294_v52, %v1538_v36  ;;  %v966_v57 = vmul.f32 %v1316_v53, %v1538_v36  ;;  %v736_v58 = vadd.f32 %v1543_v37, %v720_v50 }
  0xf4   :  { %v997_v55 = vmax.f32 %v981_v49, 0.0  ;;  %v979_v59 = vadd.f32 %v1543_v37, %v963_v51  ;;  %v660_v60 = vpop.f32.mrf.mxu0  ;;  %v903_v61 = vpop.f32.mrf.mxu1 }
  0xf5   :  { %1135 = vst.msk [vmem:[%s1933_s4 + $0x110] sm:$0xff] %vm282_vm2, %v754_v54  ;;  %v739_v62 = vadd.f32 %v1543_v37, %v723_v56  ;;  %v982_v63 = vadd.f32 %v1543_v37, %v966_v57  ;;  %v721_v0 = vmul.f32 %v1538_v36, %v660_v60  ;;  %v964_v1 = vmul.f32 %v1538_v36, %v903_v61 }
  0xf6   :  { %1183 = vst.msk [vmem:[%s1933_s4 + $0x190] sm:$0xff] %vm282_vm2, %v997_v55  ;;  %v752_v2 = vmax.f32 %v736_v58, 0.0  ;;  %v995_v3 = vmax.f32 %v979_v59, 0.0  ;;  %v1297_v4 = vpop.f32.mrf.mxu0  ;;  %v1319_v5 = vpop.f32.mrf.mxu1 }
  0xf7   :  { %v755_v6 = vmax.f32 %v739_v62, 0.0  ;;  %v998_v7 = vmax.f32 %v982_v63, 0.0  ;;  %v737_v8 = vadd.f32 %v1543_v37, %v721_v0  ;;  %v980_v9 = vadd.f32 %v1543_v37, %v964_v1 }
  0xf8   :  { %1133 = vst.msk [vmem:[%s1933_s4 + $0x100] sm:$0xff] %vm282_vm2, %v752_v2  ;;  %1181 = vst.msk [vmem:[%s1933_s4 + $0x180] sm:$0xff] %vm282_vm2, %v995_v3  ;;  %v726_v10 = vmul.f32 %v1297_v4, %v1538_v36  ;;  %v969_v11 = vmul.f32 %v1319_v5, %v1538_v36  ;;  %v673_v12 = vpop.f32.mrf.mxu0  ;;  %v916_v13 = vpop.f32.mrf.mxu1 }
  0xf9   :  { %1136 = vst.msk [vmem:[%s1933_s4 + $0x118] sm:$0xff] %vm282_vm2, %v755_v6  ;;  %1184 = vst.msk [vmem:[%s1933_s4 + $0x198] sm:$0xff] %vm282_vm2, %v998_v7  ;;  %v753_v14 = vmax.f32 %v737_v8, 0.0  ;;  %v996_v15 = vmax.f32 %v980_v9, 0.0  ;;  %v724_v16 = vmul.f32 %v1538_v36, %v673_v12  ;;  %v967_v17 = vmul.f32 %v1538_v36, %v916_v13 }
  0xfa   :  { %v742_v18 = vadd.f32 %v1543_v37, %v726_v10  ;;  %v985_v19 = vadd.f32 %v1543_v37, %v969_v11  ;;  %v1298_v20 = vpop.f32.mrf.mxu0  ;;  %v1320_v21 = vpop.f32.mrf.mxu1 }
  0xfb   :  { %1134 = vst.msk [vmem:[%s1933_s4 + $0x108] sm:$0xff] %vm282_vm2, %v753_v14  ;;  %1182 = vst.msk [vmem:[%s1933_s4 + $0x188] sm:$0xff] %vm282_vm2, %v996_v15  ;;  %v740_v22 = vadd.f32 %v1543_v37, %v724_v16  ;;  %v983_v23 = vadd.f32 %v1543_v37, %v967_v17  ;;  %v727_v24 = vmul.f32 %v1298_v20, %v1538_v36 }
  0xfc   :  { %v970_v25 = vmul.f32 %v1320_v21, %v1538_v36  ;;  %v758_v26 = vmax.f32 %v742_v18, 0.0  ;;  %v1001_v27 = vmax.f32 %v985_v19, 0.0  ;;  %v676_v28 = vpop.f32.mrf.mxu0  ;;  %v919_v29 = vpop.f32.mrf.mxu1 }
  0xfd   :  { %v756_v30 = vmax.f32 %v740_v22, 0.0  ;;  %v999_v31 = vmax.f32 %v983_v23, 0.0  ;;  %v743_v32 = vadd.f32 %v1543_v37, %v727_v24  ;;  %v725_v34 = vmul.f32 %v1538_v36, %v676_v28 }
  0xfe   :  { %v986_v33 = vadd.f32 %v1543_v37, %v970_v25  ;;  %1139 = vst.msk [vmem:[%s1933_s4 + $0x130] sm:$0xff] %vm282_vm2, %v758_v26  ;;  %1187 = vst.msk [vmem:[%s1933_s4 + $0x1b0] sm:$0xff] %vm282_vm2, %v1001_v27  ;;  %v968_v35 = vmul.f32 %v1538_v36, %v919_v29  ;;  %v1301_v38 = vpop.f32.mrf.mxu0  ;;  %v1323_v39 = vpop.f32.mrf.mxu1 }
  0xff   :  { %1137 = vst.msk [vmem:[%s1933_s4 + $0x120] sm:$0xff] %vm282_vm2, %v756_v30  ;;  %1185 = vst.msk [vmem:[%s1933_s4 + $0x1a0] sm:$0xff] %vm282_vm2, %v999_v31  ;;  %v759_v40 = vmax.f32 %v743_v32, 0.0  ;;  %v730_v42 = vmul.f32 %v1301_v38, %v1538_v36  ;;  %v973_v43 = vmul.f32 %v1323_v39, %v1538_v36  ;;  %v741_v44 = vadd.f32 %v1543_v37, %v725_v34 }
 0x100   :  { %v1002_v41 = vmax.f32 %v986_v33, 0.0  ;;  %v984_v45 = vadd.f32 %v1543_v37, %v968_v35  ;;  %v689_v46 = vpop.f32.mrf.mxu0  ;;  %v932_v47 = vpop.f32.mrf.mxu1 }
 0x101   :  { %1140 = vst.msk [vmem:[%s1933_s4 + $0x138] sm:$0xff] %vm282_vm2, %v759_v40  ;;  %v746_v48 = vadd.f32 %v1543_v37, %v730_v42  ;;  %v989_v49 = vadd.f32 %v1543_v37, %v973_v43  ;;  %v728_v50 = vmul.f32 %v1538_v36, %v689_v46  ;;  %v971_v51 = vmul.f32 %v1538_v36, %v932_v47 }
 0x102   :  { %1188 = vst.msk [vmem:[%s1933_s4 + $0x1b8] sm:$0xff] %vm282_vm2, %v1002_v41  ;;  %v757_v52 = vmax.f32 %v741_v44, 0.0  ;;  %v1000_v53 = vmax.f32 %v984_v45, 0.0  ;;  %v1302_v54 = vpop.f32.mrf.mxu0  ;;  %v1324_v55 = vpop.f32.mrf.mxu1 }
 0x103   :  { %v762_v56 = vmax.f32 %v746_v48, 0.0  ;;  %v1005_v57 = vmax.f32 %v989_v49, 0.0  ;;  %v744_v58 = vadd.f32 %v1543_v37, %v728_v50  ;;  %v987_v59 = vadd.f32 %v1543_v37, %v971_v51 }
 0x104   :  { %1138 = vst.msk [vmem:[%s1933_s4 + $0x128] sm:$0xff] %vm282_vm2, %v757_v52  ;;  %1186 = vst.msk [vmem:[%s1933_s4 + $0x1a8] sm:$0xff] %vm282_vm2, %v1000_v53  ;;  %v731_v60 = vmul.f32 %v1302_v54, %v1538_v36  ;;  %v974_v61 = vmul.f32 %v1324_v55, %v1538_v36  ;;  %v692_v62 = vpop.f32.mrf.mxu0  ;;  %v935_v63 = vpop.f32.mrf.mxu1 }
 0x105   :  { %1143 = vst.msk [vmem:[%s1933_s4 + $0x150] sm:$0xff] %vm282_vm2, %v762_v56  ;;  %1191 = vst.msk [vmem:[%s1933_s4 + $0x1d0] sm:$0xff] %vm282_vm2, %v1005_v57  ;;  %v760_v0 = vmax.f32 %v744_v58, 0.0  ;;  %v1003_v1 = vmax.f32 %v987_v59, 0.0  ;;  %v729_v2 = vmul.f32 %v1538_v36, %v692_v62  ;;  %v972_v3 = vmul.f32 %v1538_v36, %v935_v63 }
 0x106   :  { %v747_v4 = vadd.f32 %v1543_v37, %v731_v60  ;;  %v990_v5 = vadd.f32 %v1543_v37, %v974_v61  ;;  %v1305_v6 = vpop.f32.mrf.mxu0  ;;  %v1327_v7 = vpop.f32.mrf.mxu1 }
 0x107   :  { %1141 = vst.msk [vmem:[%s1933_s4 + $0x140] sm:$0xff] %vm282_vm2, %v760_v0  ;;  %1189 = vst.msk [vmem:[%s1933_s4 + $0x1c0] sm:$0xff] %vm282_vm2, %v1003_v1  ;;  %v745_v8 = vadd.f32 %v1543_v37, %v729_v2  ;;  %v988_v9 = vadd.f32 %v1543_v37, %v972_v3  ;;  %v734_v10 = vmul.f32 %v1305_v6, %v1538_v36 }
 0x108   :  { %v977_v11 = vmul.f32 %v1327_v7, %v1538_v36  ;;  %v763_v12 = vmax.f32 %v747_v4, 0.0  ;;  %v1006_v13 = vmax.f32 %v990_v5, 0.0  ;;  %v705_v14 = vpop.f32.mrf.mxu0  ;;  %v948_v15 = vpop.f32.mrf.mxu1 }
 0x109   :  { %v761_v16 = vmax.f32 %v745_v8, 0.0  ;;  %v1004_v17 = vmax.f32 %v988_v9, 0.0  ;;  %v750_v18 = vadd.f32 %v1543_v37, %v734_v10  ;;  %v732_v20 = vmul.f32 %v1538_v36, %v705_v14 }
 0x10a   :  { %v993_v19 = vadd.f32 %v1543_v37, %v977_v11  ;;  %1144 = vst.msk [vmem:[%s1933_s4 + $0x158] sm:$0xff] %vm282_vm2, %v763_v12  ;;  %1192 = vst.msk [vmem:[%s1933_s4 + $0x1d8] sm:$0xff] %vm282_vm2, %v1006_v13  ;;  %v975_v21 = vmul.f32 %v1538_v36, %v948_v15  ;;  %v1306_v22 = vpop.f32.mrf.mxu0  ;;  %v1328_v23 = vpop.f32.mrf.mxu1 }
 0x10b   :  { %1142 = vst.msk [vmem:[%s1933_s4 + $0x148] sm:$0xff] %vm282_vm2, %v761_v16  ;;  %1190 = vst.msk [vmem:[%s1933_s4 + $0x1c8] sm:$0xff] %vm282_vm2, %v1004_v17  ;;  %v766_v24 = vmax.f32 %v750_v18, 0.0  ;;  %v735_v26 = vmul.f32 %v1306_v22, %v1538_v36  ;;  %v978_v27 = vmul.f32 %v1328_v23, %v1538_v36  ;;  %v748_v28 = vadd.f32 %v1543_v37, %v732_v20 }
 0x10c   :  { %v1009_v25 = vmax.f32 %v993_v19, 0.0  ;;  %v991_v29 = vadd.f32 %v1543_v37, %v975_v21  ;;  %v708_v30 = vpop.f32.mrf.mxu0  ;;  %v951_v31 = vpop.f32.mrf.mxu1 }
 0x10d   :  { %1147 = vst.msk [vmem:[%s1933_s4 + $0x170] sm:$0xff] %vm282_vm2, %v766_v24  ;;  %v751_v32 = vadd.f32 %v1543_v37, %v735_v26  ;;  %v994_v33 = vadd.f32 %v1543_v37, %v978_v27  ;;  %v733_v34 = vmul.f32 %v1538_v36, %v708_v30  ;;  %v976_v35 = vmul.f32 %v1538_v36, %v951_v31 }
 0x10e   :  { %1195 = vst.msk [vmem:[%s1933_s4 + $0x1f0] sm:$0xff] %vm282_vm2, %v1009_v25  ;;  %v764_v38 = vmax.f32 %v748_v28, 0.0  ;;  %v1007_v39 = vmax.f32 %v991_v29, 0.0 }
 0x10f   :  { %v767_v40 = vmax.f32 %v751_v32, 0.0  ;;  %v1010_v41 = vmax.f32 %v994_v33, 0.0  ;;  %v749_v42 = vadd.f32 %v1543_v37, %v733_v34  ;;  %v992_v43 = vadd.f32 %v1543_v37, %v976_v35 }
 0x110   :  { %1145 = vst.msk [vmem:[%s1933_s4 + $0x160] sm:$0xff] %vm282_vm2, %v764_v38  ;;  %1193 = vst.msk [vmem:[%s1933_s4 + $0x1e0] sm:$0xff] %vm282_vm2, %v1007_v39 }
 0x111   :  { %1148 = vst.msk [vmem:[%s1933_s4 + $0x178] sm:$0xff] %vm282_vm2, %v767_v40  ;;  %1196 = vst.msk [vmem:[%s1933_s4 + $0x1f8] sm:$0xff] %vm282_vm2, %v1010_v41  ;;  %v765_v36 = vmax.f32 %v749_v42, 0.0  ;;  %v1008_v37 = vmax.f32 %v992_v43, 0.0 }
 0x113   :  { %1146 = vst.msk [vmem:[%s1933_s4 + $0x168] sm:$0xff] %vm282_vm2, %v765_v36  ;;  %1194 = vst.msk [vmem:[%s1933_s4 + $0x1e8] sm:$0xff] %vm282_vm2, %v1008_v37 }

// kernel: conv_batch_relu.2
= control target key start
LH: loop header
LB: loop body
LE: loop exit
PB: predicated region body
PF: predicated region fallthrough
CT: control target
= control target key end

     0   :  { %vm115_vm0 = vcmask 1041408   ;;  %vm90_vm1 = vcmask 293888   ;;  %s1461_s1 = inlined_call_operand.vmem [shape: bf16[36,128], index: 1, kind: input, shape index: {}]   ;;  %s1462_s0 = inlined_call_operand.vmem [shape: bf16[512,36], index: 0, kind: input, shape index: {}]   ;;  %s1463_s2 = inlined_call_operand.vmem [shape: f32[8,128], index: 2, kind: output, shape index: {0}]   ;;  %s1464_s3 = inlined_call_operand.vmem [shape: f32[8,128], index: 3, kind: output, shape index: {1}]  }
   0x1   :  { %v1204_v0 = vld [vmem:[%s1461_s1 + $0x8] sm:$0xff]   ;;  %v1205_v1 = vld [vmem:[%s1461_s1 + $0x10] ss:$0 sps:$4 sm:$0x33]   ;;  %v1206_v2 = vld [vmem:[%s1462_s0] sm:$0xff]  }
   0x2   :  { %1199 = vmatprep.subr.msk.bf16.mxu0 %vm115_vm0, %v1205_v1  ;;  %v117_v3 = vsel %vm115_vm0, %v1205_v1, 0  ;;  %1200 = vmatprep.subr.msk.bf16.mxu1 %vm115_vm0, %v1205_v1  ;;  %v1203_v4 = vld [vmem:[%s1461_s1] sm:$0xff]   ;;  %v1207_v5 = vld [vmem:[%s1462_s0 + $0x8] sm:$0xff]   ;;  %v1208_v7 = vld [vmem:[%s1462_s0 + $0x10] sm:$0xff]  }
   0x3   :  { %1112 = vmatpush3.bf16.msra.mxu0 %v117_v3  ;;  %1117 = vmatprep.mubr.msk.bf16.mxu0 %vm90_vm1, %v1206_v2  ;;  %v1214_v6 = vld [vmem:[%s1462_s0 + $0x40] sm:$0xff]   ;;  %v1215_v8 = vld [vmem:[%s1462_s0 + $0x48] sm:$0xff]   ;;  %v1216_v9 = vld [vmem:[%s1462_s0 + $0x50] sm:$0xff]  }
   0x4   :  { %1113 = vmatprep.subr.bf16.mxu0 %v1204_v0  ;;  %1134 = vmatpush3.bf16.msra.mxu1 %v117_v3  ;;  %v1209_v10 = vld [vmem:[%s1462_s0 + $0x18] sm:$0xff]   ;;  %v1210_v11 = vld [vmem:[%s1462_s0 + $0x20] sm:$0xff]   ;;  %v1211_v14 = vld [vmem:[%s1462_s0 + $0x28] sm:$0xff]  }
   0x5   :  { %1135 = vmatprep.subr.bf16.mxu1 %v1204_v0  ;;  %1139 = vmatprep.mubr.msk.bf16.mxu1 %vm90_vm1, %v1214_v6  ;;  %v1217_v12 = vld [vmem:[%s1462_s0 + $0x58] sm:$0xff]   ;;  %v1218_v13 = vld [vmem:[%s1462_s0 + $0x60] sm:$0xff]   ;;  %v1212_v15 = vld [vmem:[%s1462_s0 + $0x30] sm:$0xff]  }
   0x6   :  { %v1219_v16 = vld [vmem:[%s1462_s0 + $0x68] sm:$0xff]   ;;  %v1220_v17 = vld [vmem:[%s1462_s0 + $0x70] sm:$0xff]   ;;  %v1213_v18 = vld [vmem:[%s1462_s0 + $0x38] sm:$0xff]  }
   0x7   :  { %1114 = vmatpush3.bf16.msra.mxu0 %v1204_v0  ;;  %v1221_v19 = vld [vmem:[%s1462_s0 + $0x78] sm:$0xff]   ;;  %v1222_v20 = vld [vmem:[%s1462_s0 + $0x80] sm:$0xff]   ;;  %v1223_v22 = vld [vmem:[%s1462_s0 + $0x88] sm:$0xff]  }
   0x8   :  { %1115 = vmatprep.subr.bf16.mxu0 %v1203_v4  ;;  %1136 = vmatpush3.bf16.msra.mxu1 %v1204_v0  ;;  %v1230_v21 = vld [vmem:[%s1462_s0 + $0xc0] sm:$0xff]   ;;  %v1224_v23 = vld [vmem:[%s1462_s0 + $0x90] sm:$0xff]   ;;  %v1231_v24 = vld [vmem:[%s1462_s0 + $0xc8] sm:$0xff]  }
   0x9   :  { %1137 = vmatprep.subr.bf16.mxu1 %v1203_v4  ;;  %v1232_v25 = vld [vmem:[%s1462_s0 + $0xd0] sm:$0xff]   ;;  %v1225_v26 = vld [vmem:[%s1462_s0 + $0x98] sm:$0xff]   ;;  %v1226_v27 = vld [vmem:[%s1462_s0 + $0xa0] sm:$0xff]  }
   0xa   :  { %v1233_v28 = vld [vmem:[%s1462_s0 + $0xd8] sm:$0xff]   ;;  %v1234_v29 = vld [vmem:[%s1462_s0 + $0xe0] sm:$0xff]   ;;  %v1227_v30 = vld [vmem:[%s1462_s0 + $0xa8] sm:$0xff]  }
   0xb   :  { %1116 = vmatpush3.bf16.msra.mxu0 %v1203_v4  ;;  %v1228_v31 = vld [vmem:[%s1462_s0 + $0xb0] sm:$0xff]   ;;  %v1235_v32 = vld [vmem:[%s1462_s0 + $0xe8] sm:$0xff]   ;;  %v1229_v34 = vld [vmem:[%s1462_s0 + $0xb8] sm:$0xff]  }
   0xc   :  { %1138 = vmatpush3.bf16.msra.mxu1 %v1203_v4  ;;  %1201 = vmatprep.subr.msk.bf16.mxu0 %vm115_vm0, %v1205_v1  ;;  %v1236_v33 = vld [vmem:[%s1462_s0 + $0xf0] sm:$0xff]   ;;  %v1237_v35 = vld [vmem:[%s1462_s0 + $0xf8] sm:$0xff]  }
   0xd   :  { %1202 = vmatprep.subr.msk.bf16.mxu1 %vm115_vm0, %v1205_v1 }
   0xe   :  { %1118 = vmatmul.mubr.msk.bf16.vlgmr.msra.gmra.mxu0 %vm90_vm1, %v1207_v5 }
   0xf   :  { %1121 = vmatprep.mubr.msk.bf16.mxu0 %vm90_vm1, %v1208_v7  ;;  %1140 = vmatmul.mubr.msk.bf16.vlgmr.msra.gmra.mxu1 %vm90_vm1, %v1215_v8 }
  0x10   :  { %1156 = vmatpush3.bf16.msra.mxu0 %v117_v3  ;;  %1143 = vmatprep.mubr.msk.bf16.mxu1 %vm90_vm1, %v1216_v9 }
  0x11   :  { %1157 = vmatprep.subr.bf16.mxu0 %v1204_v0  ;;  %1178 = vmatpush3.bf16.msra.mxu1 %v117_v3 }
  0x12   :  { %1179 = vmatprep.subr.bf16.mxu1 %v1204_v0 }
  0x14   :  { %1158 = vmatpush3.bf16.msra.mxu0 %v1204_v0 }
  0x15   :  { %1159 = vmatprep.subr.bf16.mxu0 %v1203_v4  ;;  %1180 = vmatpush3.bf16.msra.mxu1 %v1204_v0 }
  0x16   :  { %1122 = vmatmul.mubr.msk.bf16.gmra.mxu0 %vm90_vm1, %v1209_v10  ;;  %1181 = vmatprep.subr.bf16.mxu1 %v1203_v4 }
  0x17   :  { %1125 = vmatprep.mubr.msk.bf16.mxu0 %vm90_vm1, %v1210_v11  ;;  %1144 = vmatmul.mubr.msk.bf16.gmra.mxu1 %vm90_vm1, %v1217_v12 }
  0x18   :  { %1147 = vmatprep.mubr.msk.bf16.mxu1 %vm90_vm1, %v1218_v13  ;;  %1160 = vmatpush3.bf16.msra.mxu0 %v1203_v4 }
  0x19   :  { %1182 = vmatpush3.bf16.msra.mxu1 %v1203_v4 }
  0x1e   :  { %1126 = vmatmul.mubr.msk.bf16.gmra.mxu0 %vm90_vm1, %v1211_v14 }
  0x1f   :  { %1129 = vmatprep.mubr.msk.bf16.mxu0 %vm90_vm1, %v1212_v15  ;;  %1148 = vmatmul.mubr.msk.bf16.gmra.mxu1 %vm90_vm1, %v1219_v16 }
  0x20   :  { %1151 = vmatprep.mubr.msk.bf16.mxu1 %vm90_vm1, %v1220_v17 }
  0x26   :  { %1130 = vmatmul.mubr.msk.bf16.gmra.mxu0 %vm90_vm1, %v1213_v18 }
  0x27   :  { %1152 = vmatmul.mubr.msk.bf16.gmra.mxu1 %vm90_vm1, %v1221_v19  ;;  %1161 = vmatprep.mubr.msk.bf16.mxu0 %vm90_vm1, %v1222_v20 }
  0x28   :  { %1183 = vmatprep.mubr.msk.bf16.mxu1 %vm90_vm1, %v1230_v21 }
  0x2e   :  { %1162 = vmatmul.mubr.msk.bf16.vlgmr.msra.gmra.mxu0 %vm90_vm1, %v1223_v22 }
  0x2f   :  { %1165 = vmatprep.mubr.msk.bf16.mxu0 %vm90_vm1, %v1224_v23  ;;  %1184 = vmatmul.mubr.msk.bf16.vlgmr.msra.gmra.mxu1 %vm90_vm1, %v1231_v24 }
  0x30   :  { %1187 = vmatprep.mubr.msk.bf16.mxu1 %vm90_vm1, %v1232_v25 }
  0x36   :  { %1166 = vmatmul.mubr.msk.bf16.gmra.mxu0 %vm90_vm1, %v1225_v26 }
  0x37   :  { %1169 = vmatprep.mubr.msk.bf16.mxu0 %vm90_vm1, %v1226_v27  ;;  %1188 = vmatmul.mubr.msk.bf16.gmra.mxu1 %vm90_vm1, %v1233_v28 }
  0x38   :  { %1191 = vmatprep.mubr.msk.bf16.mxu1 %vm90_vm1, %v1234_v29 }
  0x3e   :  { %1170 = vmatmul.mubr.msk.bf16.gmra.mxu0 %vm90_vm1, %v1227_v30 }
  0x3f   :  { %1173 = vmatprep.mubr.msk.bf16.mxu0 %vm90_vm1, %v1228_v31  ;;  %1192 = vmatmul.mubr.msk.bf16.gmra.mxu1 %vm90_vm1, %v1235_v32 }
  0x40   :  { %1195 = vmatprep.mubr.msk.bf16.mxu1 %vm90_vm1, %v1236_v33 }
  0x46   :  { %1174 = vmatmul.mubr.msk.bf16.gmra.mxu0 %vm90_vm1, %v1229_v34 }
  0x47   :  { %1196 = vmatmul.mubr.msk.bf16.gmra.mxu1 %vm90_vm1, %v1237_v35 }
  0xce   :  { %v1119_v36 = vpop.f32.mrf.mxu0 }
  0xcf   :  { %v1400_v37 = vpop.f32.mrf.mxu1  ;;  %v223_v47 = vmul.f32 %v1119_v36, %v1119_v36 }
  0xd0   :  { %v153_v38 = vpop.f32.mrf.mxu0 }
  0xd1   :  { %v1402_v40 = vpop.f32.mrf.mxu1  ;;  %v217_v42 = vmul.f32 %v153_v38, %v153_v38 }
  0xd2   :  { %v1120_v39 = vpop.f32.mrf.mxu0 }
  0xd3   :  { %v1404_v46 = vpop.f32.mrf.mxu1  ;;  %v226_v51 = vmul.f32 %v1120_v39, %v1120_v39 }
  0xd4   :  { %v156_v41 = vpop.f32.mrf.mxu0 }
  0xd5   :  { %v219_v43 = vadd.f32 %v156_v41, %v153_v38  ;;  %v220_v44 = vmul.f32 %v156_v41, %v156_v41  ;;  %v382_v55 = vpop.f32.mrf.mxu1 }
  0xd6   :  { %v1123_v45 = vpop.f32.mrf.mxu0 }
  0xd7   :  { %v221_v48 = vadd.f32 %v220_v44, %v217_v42  ;;  %v222_v49 = vadd.f32 %v1119_v36, %v219_v43  ;;  %v1406_v0 = vpop.f32.mrf.mxu1  ;;  %v235_v1 = vmul.f32 %v1123_v45, %v1123_v45 }
  0xd8   :  { %v169_v50 = vpop.f32.mrf.mxu0 }
  0xd9   :  { %v224_v52 = vadd.f32 %v223_v47, %v221_v48  ;;  %v225_v53 = vadd.f32 %v1120_v39, %v222_v49  ;;  %v229_v58 = vmul.f32 %v169_v50, %v169_v50  ;;  %v395_v9 = vpop.f32.mrf.mxu1  ;;  %v443_v48 = vmul.f32 %v1402_v40, %v1402_v40 }
  0xda   :  { %v1124_v54 = vpop.f32.mrf.mxu0 }
  0xdb   :  { %v227_v56 = vadd.f32 %v226_v51, %v224_v52  ;;  %v228_v57 = vadd.f32 %v225_v53, %v169_v50  ;;  %v238_v5 = vmul.f32 %v1124_v54, %v1124_v54  ;;  %v1146_v18 = vpop.f32.mrf.mxu1  ;;  %v446_v53 = vmul.f32 %v382_v55, %v382_v55 }
  0xdc   :  { %v172_v59 = vpop.f32.mrf.mxu0 }
  0xdd   :  { %v230_v60 = vadd.f32 %v229_v58, %v227_v56  ;;  %v231_v61 = vadd.f32 %v228_v57, %v172_v59  ;;  %v232_v62 = vmul.f32 %v172_v59, %v172_v59  ;;  %v398_v27 = vpop.f32.mrf.mxu1  ;;  %v449_v57 = vmul.f32 %v1400_v37, %v1400_v37 }
  0xde   :  { %v1127_v63 = vpop.f32.mrf.mxu0 }
  0xdf   :  { %v233_v2 = vadd.f32 %v232_v62, %v230_v60  ;;  %v234_v3 = vadd.f32 %v1123_v45, %v231_v61  ;;  %v247_v19 = vmul.f32 %v1127_v63, %v1127_v63  ;;  %v1149_v35 = vpop.f32.mrf.mxu1  ;;  %v452_v60 = vmul.f32 %v1404_v46, %v1404_v46 }
  0xe0   :  { %v185_v4 = vpop.f32.mrf.mxu0 }
  0xe1   :  { %v236_v6 = vadd.f32 %v235_v1, %v233_v2  ;;  %v237_v7 = vadd.f32 %v1124_v54, %v234_v3  ;;  %v241_v12 = vmul.f32 %v185_v4, %v185_v4  ;;  %v411_v45 = vpop.f32.mrf.mxu1 }
  0xe2   :  { %v1128_v8 = vpop.f32.mrf.mxu0 }
  0xe3   :  { %v239_v10 = vadd.f32 %v238_v5, %v236_v6  ;;  %v240_v11 = vadd.f32 %v237_v7, %v185_v4  ;;  %v250_v23 = vmul.f32 %v1128_v8, %v1128_v8  ;;  %v1150_v54 = vpop.f32.mrf.mxu1  ;;  %v458_v5 = vmul.f32 %v398_v27, %v398_v27 }
  0xe4   :  { %v188_v13 = vpop.f32.mrf.mxu0 }
  0xe5   :  { %v242_v14 = vadd.f32 %v241_v12, %v239_v10  ;;  %v243_v15 = vadd.f32 %v240_v11, %v188_v13  ;;  %v244_v16 = vmul.f32 %v188_v13, %v188_v13  ;;  %v464_v11 = vmul.f32 %v1146_v18, %v1146_v18 }
  0xe6   :  { %v1131_v17 = vpop.f32.mrf.mxu0 }
  0xe7   :  { %v245_v20 = vadd.f32 %v244_v16, %v242_v14  ;;  %v246_v21 = vadd.f32 %v1127_v63, %v243_v15  ;;  %v259_v38 = vmul.f32 %v1131_v17, %v1131_v17  ;;  %v414_v63 = vpop.f32.mrf.mxu1 }
  0xe8   :  { %v201_v22 = vpop.f32.mrf.mxu0 }
  0xe9   :  { %v248_v24 = vadd.f32 %v247_v19, %v245_v20  ;;  %v249_v25 = vadd.f32 %v1128_v8, %v246_v21  ;;  %v253_v30 = vmul.f32 %v201_v22, %v201_v22  ;;  %v1153_v6 = vpop.f32.mrf.mxu1  ;;  %v470_v20 = vmul.f32 %v414_v63, %v414_v63 }
  0xea   :  { %v1132_v26 = vpop.f32.mrf.mxu0 }
  0xeb   :  { %v251_v28 = vadd.f32 %v250_v23, %v248_v24  ;;  %v252_v29 = vadd.f32 %v249_v25, %v201_v22  ;;  %v262_v42 = vmul.f32 %v1132_v26, %v1132_v26  ;;  %v427_v13 = vpop.f32.mrf.mxu1  ;;  %v473_v23 = vmul.f32 %v1149_v35, %v1149_v35 }
  0xec   :  { %v204_v31 = vpop.f32.mrf.mxu0 }
  0xed   :  { %v254_v32 = vadd.f32 %v253_v30, %v251_v28  ;;  %v255_v33 = vadd.f32 %v252_v29, %v204_v31  ;;  %v256_v34 = vmul.f32 %v204_v31, %v204_v31  ;;  %v1154_v21 = vpop.f32.mrf.mxu1  ;;  %v479_v31 = vmul.f32 %v427_v13, %v427_v13 }
  0xee   :  { %v1408_v36 = vpop.f32.mrf.mxu0 }
  0xef   :  { %v257_v39 = vadd.f32 %v256_v34, %v254_v32  ;;  %v258_v41 = vadd.f32 %v1131_v17, %v255_v33 }
  0xf0   :  { %v1410_v47 = vpop.f32.mrf.mxu0 }
  0xf1   :  { %v260_v43 = vadd.f32 %v259_v38, %v257_v39  ;;  %v261_v44 = vadd.f32 %v1132_v26, %v258_v41  ;;  %v476_v26 = vmul.f32 %v1150_v54, %v1150_v54  ;;  %v485_v41 = vmul.f32 %v1153_v6, %v1153_v6 }
  0xf2   :  { %v1415_v56 = vpop.f32.mrf.mxu0 }
  0xf3   :  { %v263_v49 = vadd.f32 %v262_v42, %v260_v43  ;;  %v442_v50 = vadd.f32 %v1402_v40, %v261_v44  ;;  %v488_v44 = vmul.f32 %v1154_v21, %v1154_v21 }
  0xf4   :  { %v608_v40 = vpop.f32.mrf.mxu0 }
  0xf5   :  { %v444_v51 = vadd.f32 %v443_v48, %v263_v49  ;;  %v445_v52 = vadd.f32 %v442_v50, %v382_v55  ;;  %v455_v55 = vmul.f32 %v395_v9, %v395_v9 }
  0xf6   :  { %v1423_v7 = vpop.f32.mrf.mxu0 }
  0xf7   :  { %v447_v58 = vadd.f32 %v446_v53, %v444_v51  ;;  %v448_v59 = vadd.f32 %v1400_v37, %v445_v52  ;;  %v461_v37 = vmul.f32 %v1406_v0, %v1406_v0  ;;  %v669_v52 = vmul.f32 %v1410_v47, %v1410_v47 }
  0xf8   :  { %v621_v14 = vpop.f32.mrf.mxu0 }
  0xf9   :  { %v450_v61 = vadd.f32 %v449_v57, %v447_v58  ;;  %v451_v62 = vadd.f32 %v1404_v46, %v448_v59  ;;  %v672_v57 = vmul.f32 %v608_v40, %v608_v40 }
  0xfa   :  { %v1168_v22 = vpop.f32.mrf.mxu0 }
  0xfb   :  { %v453_v1 = vadd.f32 %v452_v60, %v450_v61  ;;  %v454_v2 = vadd.f32 %v451_v62, %v395_v9  ;;  %v467_v9 = vmul.f32 %v411_v45, %v411_v45  ;;  %v675_v60 = vmul.f32 %v1408_v36, %v1408_v36 }
  0xfc   :  { %v624_v29 = vpop.f32.mrf.mxu0 }
  0xfd   :  { %v456_v3 = vadd.f32 %v455_v55, %v453_v1  ;;  %v457_v4 = vadd.f32 %v454_v2, %v398_v27 }
  0xfe   :  { %v1171_v38 = vpop.f32.mrf.mxu0 }
  0xff   :  { %v459_v8 = vadd.f32 %v458_v5, %v456_v3  ;;  %v460_v10 = vadd.f32 %v1406_v0, %v457_v4  ;;  %v430_v0 = vpop.f32.mrf.mxu1 }
 0x100   :  { %v482_v34 = vmul.f32 %v430_v0, %v430_v0  ;;  %v637_v48 = vpop.f32.mrf.mxu0 }
 0x101   :  { %v462_v12 = vadd.f32 %v461_v37, %v459_v8  ;;  %v463_v46 = vadd.f32 %v1146_v18, %v460_v10  ;;  %v1428_v39 = vpop.f32.mrf.mxu1  ;;  %v684_v37 = vmul.f32 %v624_v29, %v624_v29 }
 0x102   :  { %v1172_v58 = vpop.f32.mrf.mxu0 }
 0x103   :  { %v465_v15 = vadd.f32 %v464_v11, %v462_v12  ;;  %v466_v16 = vadd.f32 %v463_v46, %v411_v45  ;;  %v1430_v49 = vpop.f32.mrf.mxu1  ;;  %v687_v11 = vmul.f32 %v1423_v7, %v1423_v7  ;;  %v690_v46 = vmul.f32 %v1168_v22, %v1168_v22 }
 0x104   :  { %v640_v55 = vpop.f32.mrf.mxu0 }
 0x105   :  { %v468_v17 = vadd.f32 %v467_v9, %v465_v15  ;;  %v469_v19 = vadd.f32 %v466_v16, %v414_v63  ;;  %v1435_v59 = vpop.f32.mrf.mxu1  ;;  %v678_v63 = vmul.f32 %v1415_v56, %v1415_v56 }
 0x106   :  { %v1175_v8 = vpop.f32.mrf.mxu0 }
 0x107   :  { %v471_v24 = vadd.f32 %v470_v20, %v468_v17  ;;  %v472_v25 = vadd.f32 %v1149_v35, %v469_v19  ;;  %v693_v19 = vmul.f32 %v637_v48, %v637_v48 }
 0x109   :  { %v474_v27 = vadd.f32 %v473_v23, %v471_v24  ;;  %v475_v28 = vadd.f32 %v1150_v54, %v472_v25  ;;  %v699_v25 = vmul.f32 %v1171_v38, %v1171_v38 }
 0x10b   :  { %v477_v30 = vadd.f32 %v476_v26, %v474_v27  ;;  %v478_v18 = vadd.f32 %v475_v28, %v427_v13  ;;  %v702_v28 = vmul.f32 %v1172_v58, %v1172_v58 }
 0x10d   :  { %v480_v32 = vadd.f32 %v479_v31, %v477_v30  ;;  %v481_v33 = vadd.f32 %v478_v18, %v430_v0 }
 0x10f   :  { %v483_v42 = vadd.f32 %v482_v34, %v480_v32  ;;  %v484_v43 = vadd.f32 %v1153_v6, %v481_v33 }
 0x111   :  { %v486_v45 = vadd.f32 %v485_v41, %v483_v42  ;;  %v487_v35 = vadd.f32 %v1154_v21, %v484_v43  ;;  %v696_v21 = vmul.f32 %v640_v55, %v640_v55  ;;  %v711_v42 = vmul.f32 %v1175_v8, %v1175_v8 }
 0x113   :  { %v489_v50 = vadd.f32 %v488_v44, %v486_v45  ;;  %v668_v51 = vadd.f32 %v1410_v47, %v487_v35  ;;  %v834_v47 = vpop.f32.mrf.mxu1 }
 0x115   :  { %v670_v53 = vadd.f32 %v669_v52, %v489_v50  ;;  %v671_v54 = vadd.f32 %v668_v51, %v608_v40  ;;  %v681_v40 = vmul.f32 %v621_v14, %v621_v14  ;;  %v1189_v10 = vpop.f32.mrf.mxu1  ;;  %v895_v52 = vmul.f32 %v1430_v49, %v1430_v49 }
 0x117   :  { %v673_v61 = vadd.f32 %v672_v57, %v670_v53  ;;  %v674_v62 = vadd.f32 %v1408_v36, %v671_v54  ;;  %v847_v16 = vpop.f32.mrf.mxu1  ;;  %v898_v57 = vmul.f32 %v834_v47, %v834_v47 }
 0x119   :  { %v676_v1 = vadd.f32 %v675_v60, %v673_v61  ;;  %v677_v2 = vadd.f32 %v1415_v56, %v674_v62  ;;  %v653_v56 = vpop.f32.mrf.mxu0  ;;  %v1190_v24 = vpop.f32.mrf.mxu1  ;;  %v901_v60 = vmul.f32 %v1428_v39, %v1428_v39 }
 0x11a   :  { %v705_v31 = vmul.f32 %v653_v56, %v653_v56 }
 0x11b   :  { %v679_v3 = vadd.f32 %v678_v63, %v676_v1  ;;  %v680_v4 = vadd.f32 %v677_v2, %v621_v14  ;;  %v1176_v23 = vpop.f32.mrf.mxu0  ;;  %v850_v30 = vpop.f32.mrf.mxu1  ;;  %v904_v63 = vmul.f32 %v1435_v59, %v1435_v59 }
 0x11c   :  { %v714_v45 = vmul.f32 %v1176_v23, %v1176_v23 }
 0x11d   :  { %v682_v5 = vadd.f32 %v681_v40, %v679_v3  ;;  %v683_v6 = vadd.f32 %v680_v4, %v624_v29  ;;  %v1193_v41 = vpop.f32.mrf.mxu1 }
 0x11f   :  { %v685_v36 = vadd.f32 %v684_v37, %v682_v5  ;;  %v686_v12 = vadd.f32 %v1423_v7, %v683_v6  ;;  %v656_v7 = vpop.f32.mrf.mxu0  ;;  %v863_v50 = vpop.f32.mrf.mxu1  ;;  %v913_v37 = vmul.f32 %v1189_v10, %v1189_v10 }
 0x120   :  { %v708_v34 = vmul.f32 %v656_v7, %v656_v7 }
 0x121   :  { %v688_v13 = vadd.f32 %v687_v11, %v685_v36  ;;  %v689_v15 = vadd.f32 %v1168_v22, %v686_v12  ;;  %v916_v36 = vmul.f32 %v1190_v24, %v1190_v24 }
 0x123   :  { %v691_v9 = vadd.f32 %v690_v46, %v688_v13  ;;  %v692_v17 = vadd.f32 %v689_v15, %v637_v48 }
 0x125   :  { %v694_v14 = vadd.f32 %v693_v19, %v691_v9  ;;  %v695_v20 = vadd.f32 %v692_v17, %v640_v55 }
 0x127   :  { %v697_v26 = vadd.f32 %v696_v21, %v694_v14  ;;  %v698_v27 = vadd.f32 %v1171_v38, %v695_v20  ;;  %v925_v14 = vmul.f32 %v1193_v41, %v1193_v41 }
 0x129   :  { %v700_v0 = vadd.f32 %v699_v25, %v697_v26  ;;  %v701_v29 = vadd.f32 %v1172_v58, %v698_v27  ;;  %v1194_v58 = vpop.f32.mrf.mxu1 }
 0x12a   :  { %v928_v21 = vmul.f32 %v1194_v58, %v1194_v58 }
 0x12b   :  { %v703_v18 = vadd.f32 %v702_v28, %v700_v0  ;;  %v704_v22 = vadd.f32 %v701_v29, %v653_v56  ;;  %v866_v55 = vpop.f32.mrf.mxu1  ;;  %v919_v56 = vmul.f32 %v863_v50, %v863_v50 }
 0x12c   :  { %v922_v17 = vmul.f32 %v866_v55, %v866_v55 }
 0x12d   :  { %v706_v32 = vadd.f32 %v705_v31, %v703_v18  ;;  %v707_v33 = vadd.f32 %v704_v22, %v656_v7  ;;  %v1197_v6 = vpop.f32.mrf.mxu1 }
 0x12e   :  { %v937_v7 = vmul.f32 %v1197_v6, %v1197_v6 }
 0x12f   :  { %v709_v43 = vadd.f32 %v708_v34, %v706_v32  ;;  %v710_v44 = vadd.f32 %v1175_v8, %v707_v33  ;;  %v879_v46 = vpop.f32.mrf.mxu1 }
 0x130   :  { %v931_v28 = vmul.f32 %v879_v46, %v879_v46 }
 0x131   :  { %v712_v35 = vadd.f32 %v711_v42, %v709_v43  ;;  %v713_v48 = vadd.f32 %v1176_v23, %v710_v44  ;;  %v1198_v19 = vpop.f32.mrf.mxu1 }
 0x132   :  { %v940_v22 = vmul.f32 %v1198_v19, %v1198_v19 }
 0x133   :  { %v715_v38 = vadd.f32 %v714_v45, %v712_v35  ;;  %v894_v51 = vadd.f32 %v1430_v49, %v713_v48  ;;  %v907_v49 = vmul.f32 %v847_v16, %v847_v16  ;;  %v882_v26 = vpop.f32.mrf.mxu1 }
 0x134   :  { %v934_v29 = vmul.f32 %v882_v26, %v882_v26 }
 0x135   :  { %v896_v53 = vadd.f32 %v895_v52, %v715_v38  ;;  %v897_v54 = vadd.f32 %v894_v51, %v834_v47  ;;  %v910_v47 = vmul.f32 %v850_v30, %v850_v30 }
 0x137   :  { %v899_v61 = vadd.f32 %v898_v57, %v896_v53  ;;  %v900_v62 = vadd.f32 %v1428_v39, %v897_v54 }
 0x139   :  { %v902_v1 = vadd.f32 %v901_v60, %v899_v61  ;;  %v903_v2 = vadd.f32 %v1435_v59, %v900_v62 }
 0x13b   :  { %v905_v3 = vadd.f32 %v904_v63, %v902_v1  ;;  %v906_v4 = vadd.f32 %v903_v2, %v847_v16 }
 0x13d   :  { %v908_v40 = vadd.f32 %v907_v49, %v905_v3  ;;  %v909_v5 = vadd.f32 %v906_v4, %v850_v30 }
 0x13f   :  { %v911_v8 = vadd.f32 %v910_v47, %v908_v40  ;;  %v912_v11 = vadd.f32 %v1189_v10, %v909_v5 }
 0x141   :  { %v914_v12 = vadd.f32 %v913_v37, %v911_v8  ;;  %v915_v39 = vadd.f32 %v1190_v24, %v912_v11 }
 0x143   :  { %v917_v13 = vadd.f32 %v916_v36, %v914_v12  ;;  %v918_v15 = vadd.f32 %v915_v39, %v863_v50 }
 0x145   :  { %v920_v9 = vadd.f32 %v919_v56, %v917_v13  ;;  %v921_v59 = vadd.f32 %v918_v15, %v866_v55 }
 0x147   :  { %v923_v16 = vadd.f32 %v922_v17, %v920_v9  ;;  %v924_v20 = vadd.f32 %v1193_v41, %v921_v59 }
 0x149   :  { %v926_v23 = vadd.f32 %v925_v14, %v923_v16  ;;  %v927_v25 = vadd.f32 %v1194_v58, %v924_v20 }
 0x14b   :  { %v929_v27 = vadd.f32 %v928_v21, %v926_v23  ;;  %v930_v10 = vadd.f32 %v927_v25, %v879_v46 }
 0x14d   :  { %v932_v0 = vadd.f32 %v931_v28, %v929_v27  ;;  %v933_v24 = vadd.f32 %v930_v10, %v882_v26 }
 0x14f   :  { %v935_v30 = vadd.f32 %v934_v29, %v932_v0  ;;  %v936_v18 = vadd.f32 %v1197_v6, %v933_v24 }
 0x151   :  { %v938_v31 = vadd.f32 %v937_v7, %v935_v30  ;;  %v939_v32 = vadd.f32 %v1198_v19, %v936_v18 }
 0x153   :  { %v941_v33 = vadd.f32 %v940_v22, %v938_v31  ;;  %942 = vst [vmem:[%s1463_s2] sm:$0xff] %v939_v32 }
 0x155   :  { %943 = vst [vmem:[%s1464_s3] sm:$0xff] %v941_v33 }

</bundles_post_ra>
